<compile_context>
chip_gen: v7x
topology: tpu7x:2x2x1
jax: 0.10.0
libtpu: 0.0.40
codegen_flags: <defaults>
</compile_context>

<pallas_src>
import functools
import math

import jax
import jax.numpy as jnp
from jax.experimental import pallas as pl
from jax.experimental.pallas import tpu as pltpu


# --------------------------------------------------------------------------
# In-kernel helpers
# --------------------------------------------------------------------------

def _ln(x, g, b, eps):
    """LayerNorm over the last dim (biased variance), f32 math."""
    mu = jnp.mean(x, axis=-1, keepdims=True)
    var = jnp.mean((x - mu) ** 2, axis=-1, keepdims=True)
    return (x - mu) * jax.lax.rsqrt(var + eps) * g + b


# --------------------------------------------------------------------------
# ONE fused kernel: encode + LN + PE + all encoder layers + sequence mean.
# Grid = (B,), one batch row per grid step.
# --------------------------------------------------------------------------

def _fused_forward_kernel(src_ref, pe_ref, enc_w_ref, enc_b_ref,
                          norm_g_ref, norm_b_ref, *rest,
                          num_layers, nhead, eps, scale):
    if num_layers > 0:
        (qkv_w_ref, qkv_b_ref, out_w_ref, out_b_ref,
         ff1_w_ref, ff1_b_ref, ff2_w_ref, ff2_b_ref,
         n1_g_ref, n1_b_ref, n2_g_ref, n2_b_ref,
         o_ref, qkv_scr, attn_scr) = rest
    else:
        (o_ref,) = rest

    # ---- encoder Linear -> LayerNorm -> (dropout = identity) -> + PE ----
    x = jnp.dot(src_ref[0], enc_w_ref[...],
                preferred_element_type=jnp.float32) + enc_b_ref[...]
    x = _ln(x, norm_g_ref[...], norm_b_ref[...], eps)
    # PE is added per *batch index*, broadcast over the sequence axis
    # (PyTorch batch_first indexing quirk reproduced intentionally).
    x = x + pe_ref[0]                                          # (S, D) + (1, D)

    D = x.shape[-1]
    Dh = D // nhead

    # ---- num_layers x TransformerEncoderLayer (post-norm), fully in VMEM ----
    for l in range(num_layers):                     # static, layer count small
        # One fused lane-dense (S, D) x (D, 3D) projection for all heads.
        qkv_scr[...] = (jnp.dot(x, qkv_w_ref[l],
                                preferred_element_type=jnp.float32)
                        + qkv_b_ref[l])

        # Per-head scores / softmax / PV; head output written at its column
        # offset so the out-projection below is a single K=D matmul.
        for h in range(nhead):                      # tiny static loop
            q = qkv_scr[:, h * Dh:(h + 1) * Dh] * scale
            k = qkv_scr[:, D + h * Dh:D + (h + 1) * Dh]
            v = qkv_scr[:, 2 * D + h * Dh:2 * D + (h + 1) * Dh]
            s = jax.lax.dot_general(q, k, (((1,), (1,)), ((), ())),
                                    preferred_element_type=jnp.float32)
            s = s - jnp.max(s, axis=-1, keepdims=True)
            p = jnp.exp(s)
            p = p / jnp.sum(p, axis=-1, keepdims=True)
            attn_scr[:, h * Dh:(h + 1) * Dh] = jnp.dot(
                p, v, preferred_element_type=jnp.float32)

        # Single (S, D) x (D, D) out-projection.
        attn = jnp.dot(attn_scr[...], out_w_ref[l],
                       preferred_element_type=jnp.float32) + out_b_ref[l]

        # residual + LayerNorm 1
        x1 = _ln(x + attn, n1_g_ref[l], n1_b_ref[l], eps)

        # feed-forward block
        hmid = jnp.dot(x1, ff1_w_ref[l],
                       preferred_element_type=jnp.float32) + ff1_b_ref[l]
        hmid = jnp.maximum(hmid, 0.0)
        ff = jnp.dot(hmid, ff2_w_ref[l],
                     preferred_element_type=jnp.float32) + ff2_b_ref[l]

        # residual + LayerNorm 2
        x = _ln(x1 + ff, n2_g_ref[l], n2_b_ref[l], eps)

    # ---- fused mean over the sequence dimension ----
    o_ref[0] = jnp.mean(x, axis=0, keepdims=True).astype(o_ref.dtype)


# --------------------------------------------------------------------------
# Wrapper: build specs / stacked weights and launch the single pallas_call.
# --------------------------------------------------------------------------

def ssl_transformer_forward(params, src, *, nhead, max_len=500, eps=1e-5,
                            pe=None):
    B, S, F = src.shape
    D = params["enc_w"].shape[1]
    L = len(params["layers"])
    Dh = D // nhead
    scale = 1.0 / math.sqrt(Dh)

    if pe is None:
        pe = make_pe(max_len, D)                 # (max_len, 1, D); caller may cache
    pe_b = pe[:B]                                # (B, 1, D)  -- PyTorch quirk

    args = [
        src,
        pe_b,
        params["enc_w"],
        params["enc_b"].reshape(1, D),
        params["norm_g"].reshape(1, D),
        params["norm_b"].reshape(1, D),
    ]
    in_specs = [
        pl.BlockSpec((1, S, F), lambda b: (b, 0, 0)),
        pl.BlockSpec((1, 1, D), lambda b: (b, 0, 0)),
        pl.BlockSpec((F, D), lambda b: (0, 0)),
        pl.BlockSpec((1, D), lambda b: (0, 0)),
        pl.BlockSpec((1, D), lambda b: (0, 0)),
        pl.BlockSpec((1, D), lambda b: (0, 0)),
    ]
    scratch_shapes = []

    if L > 0:
        dim_ff = params["layers"][0]["ff1_w"].shape[1]

        def stk(name, rshape=None):
            return jnp.stack(
                [lp[name] if rshape is None else lp[name].reshape(rshape)
                 for lp in params["layers"]], axis=0)

        layer_args = [
            stk("in_proj_w"),                    # (L, D, 3D)
            stk("in_proj_b", (1, 3 * D)),        # (L, 1, 3D)
            stk("out_proj_w"),                   # (L, D, D)
            stk("out_proj_b", (1, D)),           # (L, 1, D)
            stk("ff1_w"),                        # (L, D, dim_ff)
            stk("ff1_b", (1, dim_ff)),           # (L, 1, dim_ff)
            stk("ff2_w"),                        # (L, dim_ff, D)
            stk("ff2_b", (1, D)),                # (L, 1, D)
            stk("norm1_g", (1, D)), stk("norm1_b", (1, D)),
            stk("norm2_g", (1, D)), stk("norm2_b", (1, D)),
        ]
        args += layer_args

        def inv(shape):  # grid-invariant block: whole array, same block each step
            return pl.BlockSpec(shape, lambda b, _n=len(shape): (0,) * _n)

        in_specs += [inv(a.shape) for a in layer_args]
        # TODO(synk): at real model sizes (D>=512, dim_ff>=2048) mark these
        # grid-invariant weight specs pipeline_mode=pl.Buffered(1) and/or tile
        # the FF/query dims so the layer fits v7x's 64 MiB VMEM; at this toy
        # size the double-buffered footprint is < 1 MiB.

        scratch_shapes = [
            pltpu.VMEM((S, 3 * D), jnp.float32),   # fused QKV activations
            pltpu.VMEM((S, D), jnp.float32),       # concatenated head outputs
        ]

    # VMEM budget: inputs (double-buffered) + scratch + slack, capped at the
    # v7x 64 MiB per-TC ceiling.
    total_bytes = sum(int(a.size) * a.dtype.itemsize for a in args)
    vmem_limit = int(min(64 * 2**20, max(32 * 2**20, 4 * total_bytes + 2**20)))

    out = pl.pallas_call(
        functools.partial(_fused_forward_kernel, num_layers=L, nhead=nhead,
                          eps=eps, scale=scale),
        out_shape=jax.ShapeDtypeStruct((B, 1, D), src.dtype),
        grid=(B,),
        in_specs=in_specs,
        out_specs=pl.BlockSpec((1, 1, D), lambda b: (b, 0, 0)),
        scratch_shapes=scratch_shapes,
        compiler_params=pltpu.CompilerParams(
            dimension_semantics=("parallel",),
            vmem_limit_bytes=vmem_limit),
    )(*args)
    return out.reshape(B, D)


# --------------------------------------------------------------------------
# Parameters / positional encoding (plain JAX setup)
# --------------------------------------------------------------------------

def make_pe(max_len, d_model):
    position = jnp.arange(max_len, dtype=jnp.float32)[:, None]
    div_term = jnp.exp(
        jnp.arange(0, d_model, 2, dtype=jnp.float32) * (-math.log(10000.0) / d_model)
    )
    pe = jnp.zeros((max_len, d_model), jnp.float32)
    pe = pe.at[:, 0::2].set(jnp.sin(position * div_term))
    pe = pe.at[:, 1::2].set(jnp.cos(position * div_term))
    return pe[:, None, :]  # (max_len, 1, d_model)


def init_params(key, num_features, d_model, nhead, num_layers, dim_ff):
    keys = iter(jax.random.split(key, 64))

    def nrm(shape, scale=0.05):
        return (scale * jax.random.normal(next(keys), shape)).astype(jnp.float32)

    params = {
        "enc_w": nrm((num_features, d_model)),
        "enc_b": nrm((d_model,)),
        "norm_g": jnp.ones((d_model,), jnp.float32),
        "norm_b": jnp.zeros((d_model,), jnp.float32),
        "layers": [],
    }
    for _ in range(num_layers):
        params["layers"].append(dict(
            in_proj_w=nrm((d_model, 3 * d_model)),
            in_proj_b=nrm((3 * d_model,)),
            out_proj_w=nrm((d_model, d_model)),
            out_proj_b=nrm((d_model,)),
            ff1_w=nrm((d_model, dim_ff)),
            ff1_b=nrm((dim_ff,)),
            ff2_w=nrm((dim_ff, d_model)),
            ff2_b=nrm((d_model,)),
            norm1_g=jnp.ones((d_model,), jnp.float32),
            norm1_b=jnp.zeros((d_model,), jnp.float32),
            norm2_g=jnp.ones((d_model,), jnp.float32),
            norm2_b=jnp.zeros((d_model,), jnp.float32),
        ))
    return params


# --------------------------------------------------------------------------
# Pure-JAX reference (same math, no Pallas) for the correctness check
# --------------------------------------------------------------------------

def _ln_ref(x, g, b, eps=1e-5):
    mu = x.mean(-1, keepdims=True)
    var = ((x - mu) ** 2).mean(-1, keepdims=True)
    return (x - mu) * jax.lax.rsqrt(var + eps) * g + b


def forward_ref(params, src, *, nhead, max_len=500):
    B, S, _ = src.shape
    D = params["enc_w"].shape[1]
    Dh = D // nhead
    x = src @ params["enc_w"] + params["enc_b"]
    x = _ln_ref(x, params["norm_g"], params["norm_b"])
    x = x + make_pe(max_len, D)[:B]
    for lp in params["layers"]:
        qkv = x @ lp["in_proj_w"] + lp["in_proj_b"]
        q, k, v = jnp.split(qkv, 3, axis=-1)
        q = q.reshape(B, S, nhead, Dh).transpose(0, 2, 1, 3)
        k = k.reshape(B, S, nhead, Dh).transpose(0, 2, 1, 3)
        v = v.reshape(B, S, nhead, Dh).transpose(0, 2, 1, 3)
        s = jnp.einsum("bhqd,bhkd->bhqk", q, k) / math.sqrt(Dh)
        p = jax.nn.softmax(s, axis=-1)
        a = jnp.einsum("bhqk,bhkd->bhqd", p, v).transpose(0, 2, 1, 3).reshape(B, S, D)
        a = a @ lp["out_proj_w"] + lp["out_proj_b"]
        x = _ln_ref(x + a, lp["norm1_g"], lp["norm1_b"])
        h = jax.nn.relu(x @ lp["ff1_w"] + lp["ff1_b"]) @ lp["ff2_w"] + lp["ff2_b"]
        x = _ln_ref(x + h, lp["norm2_g"], lp["norm2_b"])
    return x.mean(axis=1)


# --------------------------------------------------------------------------

if __name__ == "__main__":
    B, S = 2, 8
    num_features, d_model, nhead = 16, 32, 4
    num_encoder_layers, dim_feedforward = 2, 64
    # proj_dimension is accepted by the PyTorch __init__ but unused in forward.

    key = jax.random.PRNGKey(0)
    kp, kx = jax.random.split(key)
    params = init_params(kp, num_features, d_model, nhead,
                         num_encoder_layers, dim_feedforward)
    src = jax.random.normal(kx, (B, S, num_features), jnp.float32)

    pe = make_pe(500, d_model)                    # computed once, reused
    out = ssl_transformer_forward(params, src, nhead=nhead, pe=pe)
    out = jax.block_until_ready(out)
    assert out.shape == (B, d_model), out.shape

    ref = forward_ref(params, src, nhead=nhead)
    err = float(jnp.max(jnp.abs(out - ref)))
    assert jnp.allclose(out, ref, atol=1e-4, rtol=1e-4), err

    print("KERNEL_OK")
</pallas_src>

<mosaic_0001>
module attributes {stable_mosaic.version = 11 : i64} {
  func.func @_fused_forward_kernel(%arg0: i32, %arg1: memref<1x8x16xf32, #tpu.memory_space<vmem>>, %arg2: memref<1x1x32xf32, #tpu.memory_space<vmem>>, %arg3: memref<16x32xf32, #tpu.memory_space<vmem>>, %arg4: memref<1x32xf32, #tpu.memory_space<vmem>>, %arg5: memref<1x32xf32, #tpu.memory_space<vmem>>, %arg6: memref<1x32xf32, #tpu.memory_space<vmem>>, %arg7: memref<2x32x96xf32, #tpu.memory_space<vmem>>, %arg8: memref<2x1x96xf32, #tpu.memory_space<vmem>>, %arg9: memref<2x32x32xf32, #tpu.memory_space<vmem>>, %arg10: memref<2x1x32xf32, #tpu.memory_space<vmem>>, %arg11: memref<2x32x64xf32, #tpu.memory_space<vmem>>, %arg12: memref<2x1x64xf32, #tpu.memory_space<vmem>>, %arg13: memref<2x64x32xf32, #tpu.memory_space<vmem>>, %arg14: memref<2x1x32xf32, #tpu.memory_space<vmem>>, %arg15: memref<2x1x32xf32, #tpu.memory_space<vmem>>, %arg16: memref<2x1x32xf32, #tpu.memory_space<vmem>>, %arg17: memref<2x1x32xf32, #tpu.memory_space<vmem>>, %arg18: memref<2x1x32xf32, #tpu.memory_space<vmem>>, %arg19: memref<1x1x32xf32, #tpu.memory_space<vmem>>, %arg20: memref<8x96xf32, #tpu.memory_space<vmem>>, %arg21: memref<8x32xf32, #tpu.memory_space<vmem>>) attributes {dimension_semantics = [#tpu.dimension_semantics<parallel>], iteration_bounds = array<i64: 2>, scalar_prefetch = 0 : i64, scratch_operands = 2 : i64, tpu.core_type = #tpu.core_type<tc>, window_params = [{transform_indices = @transform_0, window_bounds = array<i64: 1, 8, 16>}, {transform_indices = @transform_1, window_bounds = array<i64: 1, 1, 32>}, {pipeline_mode = #tpu.pipeline_mode<synchronous>, transform_indices = @transform_2, window_bounds = array<i64: 16, 32>}, {pipeline_mode = #tpu.pipeline_mode<synchronous>, transform_indices = @transform_3, window_bounds = array<i64: 1, 32>}, {pipeline_mode = #tpu.pipeline_mode<synchronous>, transform_indices = @transform_4, window_bounds = array<i64: 1, 32>}, {pipeline_mode = #tpu.pipeline_mode<synchronous>, transform_indices = @transform_5, window_bounds = array<i64: 1, 32>}, {pipeline_mode = #tpu.pipeline_mode<synchronous>, transform_indices = @transform_6, window_bounds = array<i64: 2, 32, 96>}, {pipeline_mode = #tpu.pipeline_mode<synchronous>, transform_indices = @transform_7, window_bounds = array<i64: 2, 1, 96>}, {pipeline_mode = #tpu.pipeline_mode<synchronous>, transform_indices = @transform_8, window_bounds = array<i64: 2, 32, 32>}, {pipeline_mode = #tpu.pipeline_mode<synchronous>, transform_indices = @transform_9, window_bounds = array<i64: 2, 1, 32>}, {pipeline_mode = #tpu.pipeline_mode<synchronous>, transform_indices = @transform_10, window_bounds = array<i64: 2, 32, 64>}, {pipeline_mode = #tpu.pipeline_mode<synchronous>, transform_indices = @transform_11, window_bounds = array<i64: 2, 1, 64>}, {pipeline_mode = #tpu.pipeline_mode<synchronous>, transform_indices = @transform_12, window_bounds = array<i64: 2, 64, 32>}, {pipeline_mode = #tpu.pipeline_mode<synchronous>, transform_indices = @transform_13, window_bounds = array<i64: 2, 1, 32>}, {pipeline_mode = #tpu.pipeline_mode<synchronous>, transform_indices = @transform_14, window_bounds = array<i64: 2, 1, 32>}, {pipeline_mode = #tpu.pipeline_mode<synchronous>, transform_indices = @transform_15, window_bounds = array<i64: 2, 1, 32>}, {pipeline_mode = #tpu.pipeline_mode<synchronous>, transform_indices = @transform_16, window_bounds = array<i64: 2, 1, 32>}, {pipeline_mode = #tpu.pipeline_mode<synchronous>, transform_indices = @transform_17, window_bounds = array<i64: 2, 1, 32>}, {transform_indices = @transform_18, window_bounds = array<i64: 1, 1, 32>}]} {
    %c0 = arith.constant 0 : index
    %c0_0 = arith.constant 0 : index
    %c0_1 = arith.constant 0 : index
    %0 = vector.load %arg1[%c0, %c0_0, %c0_1] : memref<1x8x16xf32, #tpu.memory_space<vmem>>, vector<1x8x16xf32>
    %1 = vector.shape_cast %0 : vector<1x8x16xf32> to vector<8x16xf32>
    %c0_2 = arith.constant 0 : index
    %c0_3 = arith.constant 0 : index
    %2 = vector.load %arg3[%c0_2, %c0_3] : memref<16x32xf32, #tpu.memory_space<vmem>>, vector<16x32xf32>
    %cst = arith.constant dense<0.000000e+00> : vector<8x32xf32>
    %3 = tpu.matmul %1, %2, %cst {dimension_numbers = #tpu.dot_dimension_numbers<[1], [0], [0], [1], [0, 0, 1, 1], [], []>} : vector<8x16xf32>, vector<16x32xf32>, vector<8x32xf32> -> vector<8x32xf32>
    %c0_4 = arith.constant 0 : index
    %c0_5 = arith.constant 0 : index
    %4 = vector.load %arg4[%c0_4, %c0_5] : memref<1x32xf32, #tpu.memory_space<vmem>>, vector<1x32xf32>
    %5 = vector.broadcast %4 : vector<1x32xf32> to vector<8x32xf32>
    %6 = arith.addf %3, %5 : vector<8x32xf32>
    %c0_6 = arith.constant 0 : index
    %c0_7 = arith.constant 0 : index
    %7 = vector.load %arg5[%c0_6, %c0_7] : memref<1x32xf32, #tpu.memory_space<vmem>>, vector<1x32xf32>
    %c0_8 = arith.constant 0 : index
    %c0_9 = arith.constant 0 : index
    %8 = vector.load %arg6[%c0_8, %c0_9] : memref<1x32xf32, #tpu.memory_space<vmem>>, vector<1x32xf32>
    %cst_10 = arith.constant dense<0.000000e+00> : vector<8xf32>
    %9 = vector.multi_reduction <add>, %6, %cst_10 [1] : vector<8x32xf32> to vector<8xf32>
    %10 = vector.shape_cast %9 : vector<8xf32> to vector<8x1xf32>
    %cst_11 = arith.constant 3.200000e+01 : f32
    %11 = vector.broadcast %cst_11 : f32 to vector<8x1xf32>
    %12 = arith.divf %10, %11 : vector<8x1xf32>
    %13 = vector.broadcast %12 : vector<8x1xf32> to vector<8x32xf32>
    %14 = arith.subf %6, %13 : vector<8x32xf32>
    %15 = arith.mulf %14, %14 : vector<8x32xf32>
    %cst_12 = arith.constant dense<0.000000e+00> : vector<8xf32>
    %16 = vector.multi_reduction <add>, %15, %cst_12 [1] : vector<8x32xf32> to vector<8xf32>
    %17 = vector.shape_cast %16 : vector<8xf32> to vector<8x1xf32>
    %cst_13 = arith.constant 3.200000e+01 : f32
    %18 = vector.broadcast %cst_13 : f32 to vector<8x1xf32>
    %19 = arith.divf %17, %18 : vector<8x1xf32>
    %20 = vector.broadcast %12 : vector<8x1xf32> to vector<8x32xf32>
    %21 = arith.subf %6, %20 : vector<8x32xf32>
    %cst_14 = arith.constant 9.99999974E-6 : f32
    %22 = vector.broadcast %cst_14 : f32 to vector<8x1xf32>
    %23 = arith.addf %19, %22 : vector<8x1xf32>
    %24 = math.rsqrt %23 : vector<8x1xf32>
    %25 = vector.broadcast %24 : vector<8x1xf32> to vector<8x32xf32>
    %26 = arith.mulf %21, %25 : vector<8x32xf32>
    %27 = vector.broadcast %7 : vector<1x32xf32> to vector<8x32xf32>
    %28 = arith.mulf %26, %27 : vector<8x32xf32>
    %29 = vector.broadcast %8 : vector<1x32xf32> to vector<8x32xf32>
    %30 = arith.addf %28, %29 : vector<8x32xf32>
    %c0_15 = arith.constant 0 : index
    %c0_16 = arith.constant 0 : index
    %c0_17 = arith.constant 0 : index
    %31 = vector.load %arg2[%c0_15, %c0_16, %c0_17] : memref<1x1x32xf32, #tpu.memory_space<vmem>>, vector<1x1x32xf32>
    %32 = vector.shape_cast %31 : vector<1x1x32xf32> to vector<1x32xf32>
    %33 = vector.broadcast %32 : vector<1x32xf32> to vector<8x32xf32>
    %34 = arith.addf %30, %33 : vector<8x32xf32>
    %c0_18 = arith.constant 0 : index
    %c0_19 = arith.constant 0 : index
    %c0_20 = arith.constant 0 : index
    %35 = vector.load %arg7[%c0_18, %c0_19, %c0_20] : memref<2x32x96xf32, #tpu.memory_space<vmem>>, vector<1x32x96xf32>
    %36 = vector.shape_cast %35 : vector<1x32x96xf32> to vector<32x96xf32>
    %cst_21 = arith.constant dense<0.000000e+00> : vector<8x96xf32>
    %37 = tpu.matmul %34, %36, %cst_21 {dimension_numbers = #tpu.dot_dimension_numbers<[1], [0], [0], [1], [0, 0, 1, 1], [], []>} : vector<8x32xf32>, vector<32x96xf32>, vector<8x96xf32> -> vector<8x96xf32>
    %c0_22 = arith.constant 0 : index
    %c0_23 = arith.constant 0 : index
    %c0_24 = arith.constant 0 : index
    %38 = vector.load %arg8[%c0_22, %c0_23, %c0_24] : memref<2x1x96xf32, #tpu.memory_space<vmem>>, vector<1x1x96xf32>
    %39 = vector.shape_cast %38 : vector<1x1x96xf32> to vector<1x96xf32>
    %40 = vector.broadcast %39 : vector<1x96xf32> to vector<8x96xf32>
    %41 = arith.addf %37, %40 : vector<8x96xf32>
    %c0_25 = arith.constant 0 : index
    %c0_26 = arith.constant 0 : index
    %42 = vector.load %arg20[%c0_25, %c0_26] : memref<8x96xf32, #tpu.memory_space<vmem>>, vector<8x96xf32>
    tpu.vector_store %arg20[%c0_25, %c0_26], %41 {strides = array<i32>} : memref<8x96xf32, #tpu.memory_space<vmem>>, vector<8x96xf32>,
    %c0_27 = arith.constant 0 : index
    %c0_28 = arith.constant 0 : index
    %43 = vector.load %arg20[%c0_27, %c0_28] : memref<8x96xf32, #tpu.memory_space<vmem>>, vector<8x8xf32>
    %cst_29 = arith.constant 0.353553385 : f32
    %44 = vector.broadcast %cst_29 : f32 to vector<8x8xf32>
    %45 = arith.mulf %43, %44 : vector<8x8xf32>
    %c0_30 = arith.constant 0 : index
    %c32 = arith.constant 32 : index
    %46 = vector.load %arg20[%c0_30, %c32] : memref<8x96xf32, #tpu.memory_space<vmem>>, vector<8x8xf32>
    %c0_31 = arith.constant 0 : index
    %c64 = arith.constant 64 : index
    %47 = vector.load %arg20[%c0_31, %c64] : memref<8x96xf32, #tpu.memory_space<vmem>>, vector<8x8xf32>
    %cst_32 = arith.constant dense<0.000000e+00> : vector<8x8xf32>
    %48 = tpu.matmul %45, %46, %cst_32 {dimension_numbers = #tpu.dot_dimension_numbers<[1], [1], [0], [0], [0, 0, 1, 0], [], []>} : vector<8x8xf32>, vector<8x8xf32>, vector<8x8xf32> -> vector<8x8xf32>
    %cst_33 = arith.constant dense<0xFF800000> : vector<8xf32>
    %49 = vector.multi_reduction <maximumf>, %48, %cst_33 [1] : vector<8x8xf32> to vector<8xf32>
    %50 = vector.shape_cast %49 : vector<8xf32> to vector<8x1xf32>
    %51 = vector.broadcast %50 : vector<8x1xf32> to vector<8x8xf32>
    %52 = arith.subf %48, %51 : vector<8x8xf32>
    %53 = math.exp %52 : vector<8x8xf32>
    %cst_34 = arith.constant dense<0.000000e+00> : vector<8xf32>
    %54 = vector.multi_reduction <add>, %53, %cst_34 [1] : vector<8x8xf32> to vector<8xf32>
    %55 = vector.shape_cast %54 : vector<8xf32> to vector<8x1xf32>
    %56 = vector.broadcast %55 : vector<8x1xf32> to vector<8x8xf32>
    %57 = arith.divf %53, %56 : vector<8x8xf32>
    %cst_35 = arith.constant dense<0.000000e+00> : vector<8x8xf32>
    %58 = tpu.matmul %57, %47, %cst_35 {dimension_numbers = #tpu.dot_dimension_numbers<[1], [0], [0], [1], [0, 0, 1, 1], [], []>} : vector<8x8xf32>, vector<8x8xf32>, vector<8x8xf32> -> vector<8x8xf32>
    %c0_36 = arith.constant 0 : index
    %c0_37 = arith.constant 0 : index
    %59 = vector.load %arg21[%c0_36, %c0_37] : memref<8x32xf32, #tpu.memory_space<vmem>>, vector<8x8xf32>
    tpu.vector_store %arg21[%c0_36, %c0_37], %58 {strides = array<i32>} : memref<8x32xf32, #tpu.memory_space<vmem>>, vector<8x8xf32>,
    %c0_38 = arith.constant 0 : index
    %c8 = arith.constant 8 : index
    %60 = vector.load %arg20[%c0_38, %c8] : memref<8x96xf32, #tpu.memory_space<vmem>>, vector<8x8xf32>
    %cst_39 = arith.constant 0.353553385 : f32
    %61 = vector.broadcast %cst_39 : f32 to vector<8x8xf32>
    %62 = arith.mulf %60, %61 : vector<8x8xf32>
    %c0_40 = arith.constant 0 : index
    %c40 = arith.constant 40 : index
    %63 = vector.load %arg20[%c0_40, %c40] : memref<8x96xf32, #tpu.memory_space<vmem>>, vector<8x8xf32>
    %c0_41 = arith.constant 0 : index
    %c72 = arith.constant 72 : index
    %64 = vector.load %arg20[%c0_41, %c72] : memref<8x96xf32, #tpu.memory_space<vmem>>, vector<8x8xf32>
    %cst_42 = arith.constant dense<0.000000e+00> : vector<8x8xf32>
    %65 = tpu.matmul %62, %63, %cst_42 {dimension_numbers = #tpu.dot_dimension_numbers<[1], [1], [0], [0], [0, 0, 1, 0], [], []>} : vector<8x8xf32>, vector<8x8xf32>, vector<8x8xf32> -> vector<8x8xf32>
    %cst_43 = arith.constant dense<0xFF800000> : vector<8xf32>
    %66 = vector.multi_reduction <maximumf>, %65, %cst_43 [1] : vector<8x8xf32> to vector<8xf32>
    %67 = vector.shape_cast %66 : vector<8xf32> to vector<8x1xf32>
    %68 = vector.broadcast %67 : vector<8x1xf32> to vector<8x8xf32>
    %69 = arith.subf %65, %68 : vector<8x8xf32>
    %70 = math.exp %69 : vector<8x8xf32>
    %cst_44 = arith.constant dense<0.000000e+00> : vector<8xf32>
    %71 = vector.multi_reduction <add>, %70, %cst_44 [1] : vector<8x8xf32> to vector<8xf32>
    %72 = vector.shape_cast %71 : vector<8xf32> to vector<8x1xf32>
    %73 = vector.broadcast %72 : vector<8x1xf32> to vector<8x8xf32>
    %74 = arith.divf %70, %73 : vector<8x8xf32>
    %cst_45 = arith.constant dense<0.000000e+00> : vector<8x8xf32>
    %75 = tpu.matmul %74, %64, %cst_45 {dimension_numbers = #tpu.dot_dimension_numbers<[1], [0], [0], [1], [0, 0, 1, 1], [], []>} : vector<8x8xf32>, vector<8x8xf32>, vector<8x8xf32> -> vector<8x8xf32>
    %c0_46 = arith.constant 0 : index
    %c8_47 = arith.constant 8 : index
    %76 = vector.load %arg21[%c0_46, %c8_47] : memref<8x32xf32, #tpu.memory_space<vmem>>, vector<8x8xf32>
    tpu.vector_store %arg21[%c0_46, %c8_47], %75 {strides = array<i32>} : memref<8x32xf32, #tpu.memory_space<vmem>>, vector<8x8xf32>,
    %c0_48 = arith.constant 0 : index
    %c16 = arith.constant 16 : index
    %77 = vector.load %arg20[%c0_48, %c16] : memref<8x96xf32, #tpu.memory_space<vmem>>, vector<8x8xf32>
    %cst_49 = arith.constant 0.353553385 : f32
    %78 = vector.broadcast %cst_49 : f32 to vector<8x8xf32>
    %79 = arith.mulf %77, %78 : vector<8x8xf32>
    %c0_50 = arith.constant 0 : index
    %c48 = arith.constant 48 : index
    %80 = vector.load %arg20[%c0_50, %c48] : memref<8x96xf32, #tpu.memory_space<vmem>>, vector<8x8xf32>
    %c0_51 = arith.constant 0 : index
    %c80 = arith.constant 80 : index
    %81 = vector.load %arg20[%c0_51, %c80] : memref<8x96xf32, #tpu.memory_space<vmem>>, vector<8x8xf32>
    %cst_52 = arith.constant dense<0.000000e+00> : vector<8x8xf32>
    %82 = tpu.matmul %79, %80, %cst_52 {dimension_numbers = #tpu.dot_dimension_numbers<[1], [1], [0], [0], [0, 0, 1, 0], [], []>} : vector<8x8xf32>, vector<8x8xf32>, vector<8x8xf32> -> vector<8x8xf32>
    %cst_53 = arith.constant dense<0xFF800000> : vector<8xf32>
    %83 = vector.multi_reduction <maximumf>, %82, %cst_53 [1] : vector<8x8xf32> to vector<8xf32>
    %84 = vector.shape_cast %83 : vector<8xf32> to vector<8x1xf32>
    %85 = vector.broadcast %84 : vector<8x1xf32> to vector<8x8xf32>
    %86 = arith.subf %82, %85 : vector<8x8xf32>
    %87 = math.exp %86 : vector<8x8xf32>
    %cst_54 = arith.constant dense<0.000000e+00> : vector<8xf32>
    %88 = vector.multi_reduction <add>, %87, %cst_54 [1] : vector<8x8xf32> to vector<8xf32>
    %89 = vector.shape_cast %88 : vector<8xf32> to vector<8x1xf32>
    %90 = vector.broadcast %89 : vector<8x1xf32> to vector<8x8xf32>
    %91 = arith.divf %87, %90 : vector<8x8xf32>
    %cst_55 = arith.constant dense<0.000000e+00> : vector<8x8xf32>
    %92 = tpu.matmul %91, %81, %cst_55 {dimension_numbers = #tpu.dot_dimension_numbers<[1], [0], [0], [1], [0, 0, 1, 1], [], []>} : vector<8x8xf32>, vector<8x8xf32>, vector<8x8xf32> -> vector<8x8xf32>
    %c0_56 = arith.constant 0 : index
    %c16_57 = arith.constant 16 : index
    %93 = vector.load %arg21[%c0_56, %c16_57] : memref<8x32xf32, #tpu.memory_space<vmem>>, vector<8x8xf32>
    tpu.vector_store %arg21[%c0_56, %c16_57], %92 {strides = array<i32>} : memref<8x32xf32, #tpu.memory_space<vmem>>, vector<8x8xf32>,
    %c0_58 = arith.constant 0 : index
    %c24 = arith.constant 24 : index
    %94 = vector.load %arg20[%c0_58, %c24] : memref<8x96xf32, #tpu.memory_space<vmem>>, vector<8x8xf32>
    %cst_59 = arith.constant 0.353553385 : f32
    %95 = vector.broadcast %cst_59 : f32 to vector<8x8xf32>
    %96 = arith.mulf %94, %95 : vector<8x8xf32>
    %c0_60 = arith.constant 0 : index
    %c56 = arith.constant 56 : index
    %97 = vector.load %arg20[%c0_60, %c56] : memref<8x96xf32, #tpu.memory_space<vmem>>, vector<8x8xf32>
    %c0_61 = arith.constant 0 : index
    %c88 = arith.constant 88 : index
    %98 = vector.load %arg20[%c0_61, %c88] : memref<8x96xf32, #tpu.memory_space<vmem>>, vector<8x8xf32>
    %cst_62 = arith.constant dense<0.000000e+00> : vector<8x8xf32>
    %99 = tpu.matmul %96, %97, %cst_62 {dimension_numbers = #tpu.dot_dimension_numbers<[1], [1], [0], [0], [0, 0, 1, 0], [], []>} : vector<8x8xf32>, vector<8x8xf32>, vector<8x8xf32> -> vector<8x8xf32>
    %cst_63 = arith.constant dense<0xFF800000> : vector<8xf32>
    %100 = vector.multi_reduction <maximumf>, %99, %cst_63 [1] : vector<8x8xf32> to vector<8xf32>
    %101 = vector.shape_cast %100 : vector<8xf32> to vector<8x1xf32>
    %102 = vector.broadcast %101 : vector<8x1xf32> to vector<8x8xf32>
    %103 = arith.subf %99, %102 : vector<8x8xf32>
    %104 = math.exp %103 : vector<8x8xf32>
    %cst_64 = arith.constant dense<0.000000e+00> : vector<8xf32>
    %105 = vector.multi_reduction <add>, %104, %cst_64 [1] : vector<8x8xf32> to vector<8xf32>
    %106 = vector.shape_cast %105 : vector<8xf32> to vector<8x1xf32>
    %107 = vector.broadcast %106 : vector<8x1xf32> to vector<8x8xf32>
    %108 = arith.divf %104, %107 : vector<8x8xf32>
    %cst_65 = arith.constant dense<0.000000e+00> : vector<8x8xf32>
    %109 = tpu.matmul %108, %98, %cst_65 {dimension_numbers = #tpu.dot_dimension_numbers<[1], [0], [0], [1], [0, 0, 1, 1], [], []>} : vector<8x8xf32>, vector<8x8xf32>, vector<8x8xf32> -> vector<8x8xf32>
    %c0_66 = arith.constant 0 : index
    %c24_67 = arith.constant 24 : index
    %110 = vector.load %arg21[%c0_66, %c24_67] : memref<8x32xf32, #tpu.memory_space<vmem>>, vector<8x8xf32>
    tpu.vector_store %arg21[%c0_66, %c24_67], %109 {strides = array<i32>} : memref<8x32xf32, #tpu.memory_space<vmem>>, vector<8x8xf32>,
    %c0_68 = arith.constant 0 : index
    %c0_69 = arith.constant 0 : index
    %111 = vector.load %arg21[%c0_68, %c0_69] : memref<8x32xf32, #tpu.memory_space<vmem>>, vector<8x32xf32>
    %c0_70 = arith.constant 0 : index
    %c0_71 = arith.constant 0 : index
    %c0_72 = arith.constant 0 : index
    %112 = vector.load %arg9[%c0_70, %c0_71, %c0_72] : memref<2x32x32xf32, #tpu.memory_space<vmem>>, vector<1x32x32xf32>
    %113 = vector.shape_cast %112 : vector<1x32x32xf32> to vector<32x32xf32>
    %cst_73 = arith.constant dense<0.000000e+00> : vector<8x32xf32>
    %114 = tpu.matmul %111, %113, %cst_73 {dimension_numbers = #tpu.dot_dimension_numbers<[1], [0], [0], [1], [0, 0, 1, 1], [], []>} : vector<8x32xf32>, vector<32x32xf32>, vector<8x32xf32> -> vector<8x32xf32>
    %c0_74 = arith.constant 0 : index
    %c0_75 = arith.constant 0 : index
    %c0_76 = arith.constant 0 : index
    %115 = vector.load %arg10[%c0_74, %c0_75, %c0_76] : memref<2x1x32xf32, #tpu.memory_space<vmem>>, vector<1x1x32xf32>
    %116 = vector.shape_cast %115 : vector<1x1x32xf32> to vector<1x32xf32>
    %117 = vector.broadcast %116 : vector<1x32xf32> to vector<8x32xf32>
    %118 = arith.addf %114, %117 : vector<8x32xf32>
    %119 = arith.addf %34, %118 : vector<8x32xf32>
    %c0_77 = arith.constant 0 : index
    %c0_78 = arith.constant 0 : index
    %c0_79 = arith.constant 0 : index
    %120 = vector.load %arg15[%c0_77, %c0_78, %c0_79] : memref<2x1x32xf32, #tpu.memory_space<vmem>>, vector<1x1x32xf32>
    %121 = vector.shape_cast %120 : vector<1x1x32xf32> to vector<1x32xf32>
    %c0_80 = arith.constant 0 : index
    %c0_81 = arith.constant 0 : index
    %c0_82 = arith.constant 0 : index
    %122 = vector.load %arg16[%c0_80, %c0_81, %c0_82] : memref<2x1x32xf32, #tpu.memory_space<vmem>>, vector<1x1x32xf32>
    %123 = vector.shape_cast %122 : vector<1x1x32xf32> to vector<1x32xf32>
    %cst_83 = arith.constant dense<0.000000e+00> : vector<8xf32>
    %124 = vector.multi_reduction <add>, %119, %cst_83 [1] : vector<8x32xf32> to vector<8xf32>
    %125 = vector.shape_cast %124 : vector<8xf32> to vector<8x1xf32>
    %cst_84 = arith.constant 3.200000e+01 : f32
    %126 = vector.broadcast %cst_84 : f32 to vector<8x1xf32>
    %127 = arith.divf %125, %126 : vector<8x1xf32>
    %128 = vector.broadcast %127 : vector<8x1xf32> to vector<8x32xf32>
    %129 = arith.subf %119, %128 : vector<8x32xf32>
    %130 = arith.mulf %129, %129 : vector<8x32xf32>
    %cst_85 = arith.constant dense<0.000000e+00> : vector<8xf32>
    %131 = vector.multi_reduction <add>, %130, %cst_85 [1] : vector<8x32xf32> to vector<8xf32>
    %132 = vector.shape_cast %131 : vector<8xf32> to vector<8x1xf32>
    %cst_86 = arith.constant 3.200000e+01 : f32
    %133 = vector.broadcast %cst_86 : f32 to vector<8x1xf32>
    %134 = arith.divf %132, %133 : vector<8x1xf32>
    %135 = vector.broadcast %127 : vector<8x1xf32> to vector<8x32xf32>
    %136 = arith.subf %119, %135 : vector<8x32xf32>
    %cst_87 = arith.constant 9.99999974E-6 : f32
    %137 = vector.broadcast %cst_87 : f32 to vector<8x1xf32>
    %138 = arith.addf %134, %137 : vector<8x1xf32>
    %139 = math.rsqrt %138 : vector<8x1xf32>
    %140 = vector.broadcast %139 : vector<8x1xf32> to vector<8x32xf32>
    %141 = arith.mulf %136, %140 : vector<8x32xf32>
    %142 = vector.broadcast %121 : vector<1x32xf32> to vector<8x32xf32>
    %143 = arith.mulf %141, %142 : vector<8x32xf32>
    %144 = vector.broadcast %123 : vector<1x32xf32> to vector<8x32xf32>
    %145 = arith.addf %143, %144 : vector<8x32xf32>
    %c0_88 = arith.constant 0 : index
    %c0_89 = arith.constant 0 : index
    %c0_90 = arith.constant 0 : index
    %146 = vector.load %arg11[%c0_88, %c0_89, %c0_90] : memref<2x32x64xf32, #tpu.memory_space<vmem>>, vector<1x32x64xf32>
    %147 = vector.shape_cast %146 : vector<1x32x64xf32> to vector<32x64xf32>
    %cst_91 = arith.constant dense<0.000000e+00> : vector<8x64xf32>
    %148 = tpu.matmul %145, %147, %cst_91 {dimension_numbers = #tpu.dot_dimension_numbers<[1], [0], [0], [1], [0, 0, 1, 1], [], []>} : vector<8x32xf32>, vector<32x64xf32>, vector<8x64xf32> -> vector<8x64xf32>
    %c0_92 = arith.constant 0 : index
    %c0_93 = arith.constant 0 : index
    %c0_94 = arith.constant 0 : index
    %149 = vector.load %arg12[%c0_92, %c0_93, %c0_94] : memref<2x1x64xf32, #tpu.memory_space<vmem>>, vector<1x1x64xf32>
    %150 = vector.shape_cast %149 : vector<1x1x64xf32> to vector<1x64xf32>
    %151 = vector.broadcast %150 : vector<1x64xf32> to vector<8x64xf32>
    %152 = arith.addf %148, %151 : vector<8x64xf32>
    %cst_95 = arith.constant 0.000000e+00 : f32
    %153 = vector.broadcast %cst_95 : f32 to vector<8x64xf32>
    %154 = arith.maximumf %152, %153 : vector<8x64xf32>
    %c0_96 = arith.constant 0 : index
    %c0_97 = arith.constant 0 : index
    %c0_98 = arith.constant 0 : index
    %155 = vector.load %arg13[%c0_96, %c0_97, %c0_98] : memref<2x64x32xf32, #tpu.memory_space<vmem>>, vector<1x64x32xf32>
    %156 = vector.shape_cast %155 : vector<1x64x32xf32> to vector<64x32xf32>
    %cst_99 = arith.constant dense<0.000000e+00> : vector<8x32xf32>
    %157 = tpu.matmul %154, %156, %cst_99 {dimension_numbers = #tpu.dot_dimension_numbers<[1], [0], [0], [1], [0, 0, 1, 1], [], []>} : vector<8x64xf32>, vector<64x32xf32>, vector<8x32xf32> -> vector<8x32xf32>
    %c0_100 = arith.constant 0 : index
    %c0_101 = arith.constant 0 : index
    %c0_102 = arith.constant 0 : index
    %158 = vector.load %arg14[%c0_100, %c0_101, %c0_102] : memref<2x1x32xf32, #tpu.memory_space<vmem>>, vector<1x1x32xf32>
    %159 = vector.shape_cast %158 : vector<1x1x32xf32> to vector<1x32xf32>
    %160 = vector.broadcast %159 : vector<1x32xf32> to vector<8x32xf32>
    %161 = arith.addf %157, %160 : vector<8x32xf32>
    %162 = arith.addf %145, %161 : vector<8x32xf32>
    %c0_103 = arith.constant 0 : index
    %c0_104 = arith.constant 0 : index
    %c0_105 = arith.constant 0 : index
    %163 = vector.load %arg17[%c0_103, %c0_104, %c0_105] : memref<2x1x32xf32, #tpu.memory_space<vmem>>, vector<1x1x32xf32>
    %164 = vector.shape_cast %163 : vector<1x1x32xf32> to vector<1x32xf32>
    %c0_106 = arith.constant 0 : index
    %c0_107 = arith.constant 0 : index
    %c0_108 = arith.constant 0 : index
    %165 = vector.load %arg18[%c0_106, %c0_107, %c0_108] : memref<2x1x32xf32, #tpu.memory_space<vmem>>, vector<1x1x32xf32>
    %166 = vector.shape_cast %165 : vector<1x1x32xf32> to vector<1x32xf32>
    %cst_109 = arith.constant dense<0.000000e+00> : vector<8xf32>
    %167 = vector.multi_reduction <add>, %162, %cst_109 [1] : vector<8x32xf32> to vector<8xf32>
    %168 = vector.shape_cast %167 : vector<8xf32> to vector<8x1xf32>
    %cst_110 = arith.constant 3.200000e+01 : f32
    %169 = vector.broadcast %cst_110 : f32 to vector<8x1xf32>
    %170 = arith.divf %168, %169 : vector<8x1xf32>
    %171 = vector.broadcast %170 : vector<8x1xf32> to vector<8x32xf32>
    %172 = arith.subf %162, %171 : vector<8x32xf32>
    %173 = arith.mulf %172, %172 : vector<8x32xf32>
    %cst_111 = arith.constant dense<0.000000e+00> : vector<8xf32>
    %174 = vector.multi_reduction <add>, %173, %cst_111 [1] : vector<8x32xf32> to vector<8xf32>
    %175 = vector.shape_cast %174 : vector<8xf32> to vector<8x1xf32>
    %cst_112 = arith.constant 3.200000e+01 : f32
    %176 = vector.broadcast %cst_112 : f32 to vector<8x1xf32>
    %177 = arith.divf %175, %176 : vector<8x1xf32>
    %178 = vector.broadcast %170 : vector<8x1xf32> to vector<8x32xf32>
    %179 = arith.subf %162, %178 : vector<8x32xf32>
    %cst_113 = arith.constant 9.99999974E-6 : f32
    %180 = vector.broadcast %cst_113 : f32 to vector<8x1xf32>
    %181 = arith.addf %177, %180 : vector<8x1xf32>
    %182 = math.rsqrt %181 : vector<8x1xf32>
    %183 = vector.broadcast %182 : vector<8x1xf32> to vector<8x32xf32>
    %184 = arith.mulf %179, %183 : vector<8x32xf32>
    %185 = vector.broadcast %164 : vector<1x32xf32> to vector<8x32xf32>
    %186 = arith.mulf %184, %185 : vector<8x32xf32>
    %187 = vector.broadcast %166 : vector<1x32xf32> to vector<8x32xf32>
    %188 = arith.addf %186, %187 : vector<8x32xf32>
    %c1 = arith.constant 1 : index
    %c0_114 = arith.constant 0 : index
    %c0_115 = arith.constant 0 : index
    %189 = vector.load %arg7[%c1, %c0_114, %c0_115] : memref<2x32x96xf32, #tpu.memory_space<vmem>>, vector<1x32x96xf32>
    %190 = vector.shape_cast %189 : vector<1x32x96xf32> to vector<32x96xf32>
    %cst_116 = arith.constant dense<0.000000e+00> : vector<8x96xf32>
    %191 = tpu.matmul %188, %190, %cst_116 {dimension_numbers = #tpu.dot_dimension_numbers<[1], [0], [0], [1], [0, 0, 1, 1], [], []>} : vector<8x32xf32>, vector<32x96xf32>, vector<8x96xf32> -> vector<8x96xf32>
    %c1_117 = arith.constant 1 : index
    %c0_118 = arith.constant 0 : index
    %c0_119 = arith.constant 0 : index
    %192 = vector.load %arg8[%c1_117, %c0_118, %c0_119] : memref<2x1x96xf32, #tpu.memory_space<vmem>>, vector<1x1x96xf32>
    %193 = vector.shape_cast %192 : vector<1x1x96xf32> to vector<1x96xf32>
    %194 = vector.broadcast %193 : vector<1x96xf32> to vector<8x96xf32>
    %195 = arith.addf %191, %194 : vector<8x96xf32>
    %c0_120 = arith.constant 0 : index
    %c0_121 = arith.constant 0 : index
    %196 = vector.load %arg20[%c0_120, %c0_121] : memref<8x96xf32, #tpu.memory_space<vmem>>, vector<8x96xf32>
    tpu.vector_store %arg20[%c0_120, %c0_121], %195 {strides = array<i32>} : memref<8x96xf32, #tpu.memory_space<vmem>>, vector<8x96xf32>,
    %c0_122 = arith.constant 0 : index
    %c0_123 = arith.constant 0 : index
    %197 = vector.load %arg20[%c0_122, %c0_123] : memref<8x96xf32, #tpu.memory_space<vmem>>, vector<8x8xf32>
    %cst_124 = arith.constant 0.353553385 : f32
    %198 = vector.broadcast %cst_124 : f32 to vector<8x8xf32>
    %199 = arith.mulf %197, %198 : vector<8x8xf32>
    %c0_125 = arith.constant 0 : index
    %c32_126 = arith.constant 32 : index
    %200 = vector.load %arg20[%c0_125, %c32_126] : memref<8x96xf32, #tpu.memory_space<vmem>>, vector<8x8xf32>
    %c0_127 = arith.constant 0 : index
    %c64_128 = arith.constant 64 : index
    %201 = vector.load %arg20[%c0_127, %c64_128] : memref<8x96xf32, #tpu.memory_space<vmem>>, vector<8x8xf32>
    %cst_129 = arith.constant dense<0.000000e+00> : vector<8x8xf32>
    %202 = tpu.matmul %199, %200, %cst_129 {dimension_numbers = #tpu.dot_dimension_numbers<[1], [1], [0], [0], [0, 0, 1, 0], [], []>} : vector<8x8xf32>, vector<8x8xf32>, vector<8x8xf32> -> vector<8x8xf32>
    %cst_130 = arith.constant dense<0xFF800000> : vector<8xf32>
    %203 = vector.multi_reduction <maximumf>, %202, %cst_130 [1] : vector<8x8xf32> to vector<8xf32>
    %204 = vector.shape_cast %203 : vector<8xf32> to vector<8x1xf32>
    %205 = vector.broadcast %204 : vector<8x1xf32> to vector<8x8xf32>
    %206 = arith.subf %202, %205 : vector<8x8xf32>
    %207 = math.exp %206 : vector<8x8xf32>
    %cst_131 = arith.constant dense<0.000000e+00> : vector<8xf32>
    %208 = vector.multi_reduction <add>, %207, %cst_131 [1] : vector<8x8xf32> to vector<8xf32>
    %209 = vector.shape_cast %208 : vector<8xf32> to vector<8x1xf32>
    %210 = vector.broadcast %209 : vector<8x1xf32> to vector<8x8xf32>
    %211 = arith.divf %207, %210 : vector<8x8xf32>
    %cst_132 = arith.constant dense<0.000000e+00> : vector<8x8xf32>
    %212 = tpu.matmul %211, %201, %cst_132 {dimension_numbers = #tpu.dot_dimension_numbers<[1], [0], [0], [1], [0, 0, 1, 1], [], []>} : vector<8x8xf32>, vector<8x8xf32>, vector<8x8xf32> -> vector<8x8xf32>
    %c0_133 = arith.constant 0 : index
    %c0_134 = arith.constant 0 : index
    %213 = vector.load %arg21[%c0_133, %c0_134] : memref<8x32xf32, #tpu.memory_space<vmem>>, vector<8x8xf32>
    tpu.vector_store %arg21[%c0_133, %c0_134], %212 {strides = array<i32>} : memref<8x32xf32, #tpu.memory_space<vmem>>, vector<8x8xf32>,
    %c0_135 = arith.constant 0 : index
    %c8_136 = arith.constant 8 : index
    %214 = vector.load %arg20[%c0_135, %c8_136] : memref<8x96xf32, #tpu.memory_space<vmem>>, vector<8x8xf32>
    %cst_137 = arith.constant 0.353553385 : f32
    %215 = vector.broadcast %cst_137 : f32 to vector<8x8xf32>
    %216 = arith.mulf %214, %215 : vector<8x8xf32>
    %c0_138 = arith.constant 0 : index
    %c40_139 = arith.constant 40 : index
    %217 = vector.load %arg20[%c0_138, %c40_139] : memref<8x96xf32, #tpu.memory_space<vmem>>, vector<8x8xf32>
    %c0_140 = arith.constant 0 : index
    %c72_141 = arith.constant 72 : index
    %218 = vector.load %arg20[%c0_140, %c72_141] : memref<8x96xf32, #tpu.memory_space<vmem>>, vector<8x8xf32>
    %cst_142 = arith.constant dense<0.000000e+00> : vector<8x8xf32>
    %219 = tpu.matmul %216, %217, %cst_142 {dimension_numbers = #tpu.dot_dimension_numbers<[1], [1], [0], [0], [0, 0, 1, 0], [], []>} : vector<8x8xf32>, vector<8x8xf32>, vector<8x8xf32> -> vector<8x8xf32>
    %cst_143 = arith.constant dense<0xFF800000> : vector<8xf32>
    %220 = vector.multi_reduction <maximumf>, %219, %cst_143 [1] : vector<8x8xf32> to vector<8xf32>
    %221 = vector.shape_cast %220 : vector<8xf32> to vector<8x1xf32>
    %222 = vector.broadcast %221 : vector<8x1xf32> to vector<8x8xf32>
    %223 = arith.subf %219, %222 : vector<8x8xf32>
    %224 = math.exp %223 : vector<8x8xf32>
    %cst_144 = arith.constant dense<0.000000e+00> : vector<8xf32>
    %225 = vector.multi_reduction <add>, %224, %cst_144 [1] : vector<8x8xf32> to vector<8xf32>
    %226 = vector.shape_cast %225 : vector<8xf32> to vector<8x1xf32>
    %227 = vector.broadcast %226 : vector<8x1xf32> to vector<8x8xf32>
    %228 = arith.divf %224, %227 : vector<8x8xf32>
    %cst_145 = arith.constant dense<0.000000e+00> : vector<8x8xf32>
    %229 = tpu.matmul %228, %218, %cst_145 {dimension_numbers = #tpu.dot_dimension_numbers<[1], [0], [0], [1], [0, 0, 1, 1], [], []>} : vector<8x8xf32>, vector<8x8xf32>, vector<8x8xf32> -> vector<8x8xf32>
    %c0_146 = arith.constant 0 : index
    %c8_147 = arith.constant 8 : index
    %230 = vector.load %arg21[%c0_146, %c8_147] : memref<8x32xf32, #tpu.memory_space<vmem>>, vector<8x8xf32>
    tpu.vector_store %arg21[%c0_146, %c8_147], %229 {strides = array<i32>} : memref<8x32xf32, #tpu.memory_space<vmem>>, vector<8x8xf32>,
    %c0_148 = arith.constant 0 : index
    %c16_149 = arith.constant 16 : index
    %231 = vector.load %arg20[%c0_148, %c16_149] : memref<8x96xf32, #tpu.memory_space<vmem>>, vector<8x8xf32>
    %cst_150 = arith.constant 0.353553385 : f32
    %232 = vector.broadcast %cst_150 : f32 to vector<8x8xf32>
    %233 = arith.mulf %231, %232 : vector<8x8xf32>
    %c0_151 = arith.constant 0 : index
    %c48_152 = arith.constant 48 : index
    %234 = vector.load %arg20[%c0_151, %c48_152] : memref<8x96xf32, #tpu.memory_space<vmem>>, vector<8x8xf32>
    %c0_153 = arith.constant 0 : index
    %c80_154 = arith.constant 80 : index
    %235 = vector.load %arg20[%c0_153, %c80_154] : memref<8x96xf32, #tpu.memory_space<vmem>>, vector<8x8xf32>
    %cst_155 = arith.constant dense<0.000000e+00> : vector<8x8xf32>
    %236 = tpu.matmul %233, %234, %cst_155 {dimension_numbers = #tpu.dot_dimension_numbers<[1], [1], [0], [0], [0, 0, 1, 0], [], []>} : vector<8x8xf32>, vector<8x8xf32>, vector<8x8xf32> -> vector<8x8xf32>
    %cst_156 = arith.constant dense<0xFF800000> : vector<8xf32>
    %237 = vector.multi_reduction <maximumf>, %236, %cst_156 [1] : vector<8x8xf32> to vector<8xf32>
    %238 = vector.shape_cast %237 : vector<8xf32> to vector<8x1xf32>
    %239 = vector.broadcast %238 : vector<8x1xf32> to vector<8x8xf32>
    %240 = arith.subf %236, %239 : vector<8x8xf32>
    %241 = math.exp %240 : vector<8x8xf32>
    %cst_157 = arith.constant dense<0.000000e+00> : vector<8xf32>
    %242 = vector.multi_reduction <add>, %241, %cst_157 [1] : vector<8x8xf32> to vector<8xf32>
    %243 = vector.shape_cast %242 : vector<8xf32> to vector<8x1xf32>
    %244 = vector.broadcast %243 : vector<8x1xf32> to vector<8x8xf32>
    %245 = arith.divf %241, %244 : vector<8x8xf32>
    %cst_158 = arith.constant dense<0.000000e+00> : vector<8x8xf32>
    %246 = tpu.matmul %245, %235, %cst_158 {dimension_numbers = #tpu.dot_dimension_numbers<[1], [0], [0], [1], [0, 0, 1, 1], [], []>} : vector<8x8xf32>, vector<8x8xf32>, vector<8x8xf32> -> vector<8x8xf32>
    %c0_159 = arith.constant 0 : index
    %c16_160 = arith.constant 16 : index
    %247 = vector.load %arg21[%c0_159, %c16_160] : memref<8x32xf32, #tpu.memory_space<vmem>>, vector<8x8xf32>
    tpu.vector_store %arg21[%c0_159, %c16_160], %246 {strides = array<i32>} : memref<8x32xf32, #tpu.memory_space<vmem>>, vector<8x8xf32>,
    %c0_161 = arith.constant 0 : index
    %c24_162 = arith.constant 24 : index
    %248 = vector.load %arg20[%c0_161, %c24_162] : memref<8x96xf32, #tpu.memory_space<vmem>>, vector<8x8xf32>
    %cst_163 = arith.constant 0.353553385 : f32
    %249 = vector.broadcast %cst_163 : f32 to vector<8x8xf32>
    %250 = arith.mulf %248, %249 : vector<8x8xf32>
    %c0_164 = arith.constant 0 : index
    %c56_165 = arith.constant 56 : index
    %251 = vector.load %arg20[%c0_164, %c56_165] : memref<8x96xf32, #tpu.memory_space<vmem>>, vector<8x8xf32>
    %c0_166 = arith.constant 0 : index
    %c88_167 = arith.constant 88 : index
    %252 = vector.load %arg20[%c0_166, %c88_167] : memref<8x96xf32, #tpu.memory_space<vmem>>, vector<8x8xf32>
    %cst_168 = arith.constant dense<0.000000e+00> : vector<8x8xf32>
    %253 = tpu.matmul %250, %251, %cst_168 {dimension_numbers = #tpu.dot_dimension_numbers<[1], [1], [0], [0], [0, 0, 1, 0], [], []>} : vector<8x8xf32>, vector<8x8xf32>, vector<8x8xf32> -> vector<8x8xf32>
    %cst_169 = arith.constant dense<0xFF800000> : vector<8xf32>
    %254 = vector.multi_reduction <maximumf>, %253, %cst_169 [1] : vector<8x8xf32> to vector<8xf32>
    %255 = vector.shape_cast %254 : vector<8xf32> to vector<8x1xf32>
    %256 = vector.broadcast %255 : vector<8x1xf32> to vector<8x8xf32>
    %257 = arith.subf %253, %256 : vector<8x8xf32>
    %258 = math.exp %257 : vector<8x8xf32>
    %cst_170 = arith.constant dense<0.000000e+00> : vector<8xf32>
    %259 = vector.multi_reduction <add>, %258, %cst_170 [1] : vector<8x8xf32> to vector<8xf32>
    %260 = vector.shape_cast %259 : vector<8xf32> to vector<8x1xf32>
    %261 = vector.broadcast %260 : vector<8x1xf32> to vector<8x8xf32>
    %262 = arith.divf %258, %261 : vector<8x8xf32>
    %cst_171 = arith.constant dense<0.000000e+00> : vector<8x8xf32>
    %263 = tpu.matmul %262, %252, %cst_171 {dimension_numbers = #tpu.dot_dimension_numbers<[1], [0], [0], [1], [0, 0, 1, 1], [], []>} : vector<8x8xf32>, vector<8x8xf32>, vector<8x8xf32> -> vector<8x8xf32>
    %c0_172 = arith.constant 0 : index
    %c24_173 = arith.constant 24 : index
    %264 = vector.load %arg21[%c0_172, %c24_173] : memref<8x32xf32, #tpu.memory_space<vmem>>, vector<8x8xf32>
    tpu.vector_store %arg21[%c0_172, %c24_173], %263 {strides = array<i32>} : memref<8x32xf32, #tpu.memory_space<vmem>>, vector<8x8xf32>,
    %c0_174 = arith.constant 0 : index
    %c0_175 = arith.constant 0 : index
    %265 = vector.load %arg21[%c0_174, %c0_175] : memref<8x32xf32, #tpu.memory_space<vmem>>, vector<8x32xf32>
    %c1_176 = arith.constant 1 : index
    %c0_177 = arith.constant 0 : index
    %c0_178 = arith.constant 0 : index
    %266 = vector.load %arg9[%c1_176, %c0_177, %c0_178] : memref<2x32x32xf32, #tpu.memory_space<vmem>>, vector<1x32x32xf32>
    %267 = vector.shape_cast %266 : vector<1x32x32xf32> to vector<32x32xf32>
    %cst_179 = arith.constant dense<0.000000e+00> : vector<8x32xf32>
    %268 = tpu.matmul %265, %267, %cst_179 {dimension_numbers = #tpu.dot_dimension_numbers<[1], [0], [0], [1], [0, 0, 1, 1], [], []>} : vector<8x32xf32>, vector<32x32xf32>, vector<8x32xf32> -> vector<8x32xf32>
    %c1_180 = arith.constant 1 : index
    %c0_181 = arith.constant 0 : index
    %c0_182 = arith.constant 0 : index
    %269 = vector.load %arg10[%c1_180, %c0_181, %c0_182] : memref<2x1x32xf32, #tpu.memory_space<vmem>>, vector<1x1x32xf32>
    %270 = vector.shape_cast %269 : vector<1x1x32xf32> to vector<1x32xf32>
    %271 = vector.broadcast %270 : vector<1x32xf32> to vector<8x32xf32>
    %272 = arith.addf %268, %271 : vector<8x32xf32>
    %273 = arith.addf %188, %272 : vector<8x32xf32>
    %c1_183 = arith.constant 1 : index
    %c0_184 = arith.constant 0 : index
    %c0_185 = arith.constant 0 : index
    %274 = vector.load %arg15[%c1_183, %c0_184, %c0_185] : memref<2x1x32xf32, #tpu.memory_space<vmem>>, vector<1x1x32xf32>
    %275 = vector.shape_cast %274 : vector<1x1x32xf32> to vector<1x32xf32>
    %c1_186 = arith.constant 1 : index
    %c0_187 = arith.constant 0 : index
    %c0_188 = arith.constant 0 : index
    %276 = vector.load %arg16[%c1_186, %c0_187, %c0_188] : memref<2x1x32xf32, #tpu.memory_space<vmem>>, vector<1x1x32xf32>
    %277 = vector.shape_cast %276 : vector<1x1x32xf32> to vector<1x32xf32>
    %cst_189 = arith.constant dense<0.000000e+00> : vector<8xf32>
    %278 = vector.multi_reduction <add>, %273, %cst_189 [1] : vector<8x32xf32> to vector<8xf32>
    %279 = vector.shape_cast %278 : vector<8xf32> to vector<8x1xf32>
    %cst_190 = arith.constant 3.200000e+01 : f32
    %280 = vector.broadcast %cst_190 : f32 to vector<8x1xf32>
    %281 = arith.divf %279, %280 : vector<8x1xf32>
    %282 = vector.broadcast %281 : vector<8x1xf32> to vector<8x32xf32>
    %283 = arith.subf %273, %282 : vector<8x32xf32>
    %284 = arith.mulf %283, %283 : vector<8x32xf32>
    %cst_191 = arith.constant dense<0.000000e+00> : vector<8xf32>
    %285 = vector.multi_reduction <add>, %284, %cst_191 [1] : vector<8x32xf32> to vector<8xf32>
    %286 = vector.shape_cast %285 : vector<8xf32> to vector<8x1xf32>
    %cst_192 = arith.constant 3.200000e+01 : f32
    %287 = vector.broadcast %cst_192 : f32 to vector<8x1xf32>
    %288 = arith.divf %286, %287 : vector<8x1xf32>
    %289 = vector.broadcast %281 : vector<8x1xf32> to vector<8x32xf32>
    %290 = arith.subf %273, %289 : vector<8x32xf32>
    %cst_193 = arith.constant 9.99999974E-6 : f32
    %291 = vector.broadcast %cst_193 : f32 to vector<8x1xf32>
    %292 = arith.addf %288, %291 : vector<8x1xf32>
    %293 = math.rsqrt %292 : vector<8x1xf32>
    %294 = vector.broadcast %293 : vector<8x1xf32> to vector<8x32xf32>
    %295 = arith.mulf %290, %294 : vector<8x32xf32>
    %296 = vector.broadcast %275 : vector<1x32xf32> to vector<8x32xf32>
    %297 = arith.mulf %295, %296 : vector<8x32xf32>
    %298 = vector.broadcast %277 : vector<1x32xf32> to vector<8x32xf32>
    %299 = arith.addf %297, %298 : vector<8x32xf32>
    %c1_194 = arith.constant 1 : index
    %c0_195 = arith.constant 0 : index
    %c0_196 = arith.constant 0 : index
    %300 = vector.load %arg11[%c1_194, %c0_195, %c0_196] : memref<2x32x64xf32, #tpu.memory_space<vmem>>, vector<1x32x64xf32>
    %301 = vector.shape_cast %300 : vector<1x32x64xf32> to vector<32x64xf32>
    %cst_197 = arith.constant dense<0.000000e+00> : vector<8x64xf32>
    %302 = tpu.matmul %299, %301, %cst_197 {dimension_numbers = #tpu.dot_dimension_numbers<[1], [0], [0], [1], [0, 0, 1, 1], [], []>} : vector<8x32xf32>, vector<32x64xf32>, vector<8x64xf32> -> vector<8x64xf32>
    %c1_198 = arith.constant 1 : index
    %c0_199 = arith.constant 0 : index
    %c0_200 = arith.constant 0 : index
    %303 = vector.load %arg12[%c1_198, %c0_199, %c0_200] : memref<2x1x64xf32, #tpu.memory_space<vmem>>, vector<1x1x64xf32>
    %304 = vector.shape_cast %303 : vector<1x1x64xf32> to vector<1x64xf32>
    %305 = vector.broadcast %304 : vector<1x64xf32> to vector<8x64xf32>
    %306 = arith.addf %302, %305 : vector<8x64xf32>
    %cst_201 = arith.constant 0.000000e+00 : f32
    %307 = vector.broadcast %cst_201 : f32 to vector<8x64xf32>
    %308 = arith.maximumf %306, %307 : vector<8x64xf32>
    %c1_202 = arith.constant 1 : index
    %c0_203 = arith.constant 0 : index
    %c0_204 = arith.constant 0 : index
    %309 = vector.load %arg13[%c1_202, %c0_203, %c0_204] : memref<2x64x32xf32, #tpu.memory_space<vmem>>, vector<1x64x32xf32>
    %310 = vector.shape_cast %309 : vector<1x64x32xf32> to vector<64x32xf32>
    %cst_205 = arith.constant dense<0.000000e+00> : vector<8x32xf32>
    %311 = tpu.matmul %308, %310, %cst_205 {dimension_numbers = #tpu.dot_dimension_numbers<[1], [0], [0], [1], [0, 0, 1, 1], [], []>} : vector<8x64xf32>, vector<64x32xf32>, vector<8x32xf32> -> vector<8x32xf32>
    %c1_206 = arith.constant 1 : index
    %c0_207 = arith.constant 0 : index
    %c0_208 = arith.constant 0 : index
    %312 = vector.load %arg14[%c1_206, %c0_207, %c0_208] : memref<2x1x32xf32, #tpu.memory_space<vmem>>, vector<1x1x32xf32>
    %313 = vector.shape_cast %312 : vector<1x1x32xf32> to vector<1x32xf32>
    %314 = vector.broadcast %313 : vector<1x32xf32> to vector<8x32xf32>
    %315 = arith.addf %311, %314 : vector<8x32xf32>
    %316 = arith.addf %299, %315 : vector<8x32xf32>
    %c1_209 = arith.constant 1 : index
    %c0_210 = arith.constant 0 : index
    %c0_211 = arith.constant 0 : index
    %317 = vector.load %arg17[%c1_209, %c0_210, %c0_211] : memref<2x1x32xf32, #tpu.memory_space<vmem>>, vector<1x1x32xf32>
    %318 = vector.shape_cast %317 : vector<1x1x32xf32> to vector<1x32xf32>
    %c1_212 = arith.constant 1 : index
    %c0_213 = arith.constant 0 : index
    %c0_214 = arith.constant 0 : index
    %319 = vector.load %arg18[%c1_212, %c0_213, %c0_214] : memref<2x1x32xf32, #tpu.memory_space<vmem>>, vector<1x1x32xf32>
    %320 = vector.shape_cast %319 : vector<1x1x32xf32> to vector<1x32xf32>
    %cst_215 = arith.constant dense<0.000000e+00> : vector<8xf32>
    %321 = vector.multi_reduction <add>, %316, %cst_215 [1] : vector<8x32xf32> to vector<8xf32>
    %322 = vector.shape_cast %321 : vector<8xf32> to vector<8x1xf32>
    %cst_216 = arith.constant 3.200000e+01 : f32
    %323 = vector.broadcast %cst_216 : f32 to vector<8x1xf32>
    %324 = arith.divf %322, %323 : vector<8x1xf32>
    %325 = vector.broadcast %324 : vector<8x1xf32> to vector<8x32xf32>
    %326 = arith.subf %316, %325 : vector<8x32xf32>
    %327 = arith.mulf %326, %326 : vector<8x32xf32>
    %cst_217 = arith.constant dense<0.000000e+00> : vector<8xf32>
    %328 = vector.multi_reduction <add>, %327, %cst_217 [1] : vector<8x32xf32> to vector<8xf32>
    %329 = vector.shape_cast %328 : vector<8xf32> to vector<8x1xf32>
    %cst_218 = arith.constant 3.200000e+01 : f32
    %330 = vector.broadcast %cst_218 : f32 to vector<8x1xf32>
    %331 = arith.divf %329, %330 : vector<8x1xf32>
    %332 = vector.broadcast %324 : vector<8x1xf32> to vector<8x32xf32>
    %333 = arith.subf %316, %332 : vector<8x32xf32>
    %cst_219 = arith.constant 9.99999974E-6 : f32
    %334 = vector.broadcast %cst_219 : f32 to vector<8x1xf32>
    %335 = arith.addf %331, %334 : vector<8x1xf32>
    %336 = math.rsqrt %335 : vector<8x1xf32>
    %337 = vector.broadcast %336 : vector<8x1xf32> to vector<8x32xf32>
    %338 = arith.mulf %333, %337 : vector<8x32xf32>
    %339 = vector.broadcast %318 : vector<1x32xf32> to vector<8x32xf32>
    %340 = arith.mulf %338, %339 : vector<8x32xf32>
    %341 = vector.broadcast %320 : vector<1x32xf32> to vector<8x32xf32>
    %342 = arith.addf %340, %341 : vector<8x32xf32>
    %cst_220 = arith.constant dense<0.000000e+00> : vector<32xf32>
    %343 = vector.multi_reduction <add>, %342, %cst_220 [0] : vector<8x32xf32> to vector<32xf32>
    %344 = vector.shape_cast %343 : vector<32xf32> to vector<1x32xf32>
    %cst_221 = arith.constant 8.000000e+00 : f32
    %345 = vector.broadcast %cst_221 : f32 to vector<1x32xf32>
    %346 = arith.divf %344, %345 : vector<1x32xf32>
    %c0_222 = arith.constant 0 : index
    %c0_223 = arith.constant 0 : index
    %c0_224 = arith.constant 0 : index
    %347 = vector.load %arg19[%c0_222, %c0_223, %c0_224] : memref<1x1x32xf32, #tpu.memory_space<vmem>>, vector<1x1x32xf32>
    %348 = vector.shape_cast %347 : vector<1x1x32xf32> to vector<1x32xf32>
    %349 = vector.shape_cast %346 : vector<1x32xf32> to vector<1x1x32xf32>
    tpu.vector_store %arg19[%c0_222, %c0_223, %c0_224], %349 {strides = array<i32>} : memref<1x1x32xf32, #tpu.memory_space<vmem>>, vector<1x1x32xf32>,
    return
  }
  func.func @transform_0(%arg0: i32) -> (i32, i32, i32) {
    %c0_i32 = arith.constant 0 : i32
    %c0_i32_0 = arith.constant 0 : i32
    %c0_i32_1 = arith.constant 0 : i32
    return %arg0, %c0_i32, %c0_i32_0 : i32, i32, i32
  }
  func.func @transform_1(%arg0: i32) -> (i32, i32, i32) {
    %c0_i32 = arith.constant 0 : i32
    %c0_i32_0 = arith.constant 0 : i32
    %c0_i32_1 = arith.constant 0 : i32
    return %arg0, %c0_i32, %c0_i32_0 : i32, i32, i32
  }
  func.func @transform_2(%arg0: i32) -> (i32, i32) {
    %c0_i32 = arith.constant 0 : i32
    %c0_i32_0 = arith.constant 0 : i32
    %c0_i32_1 = arith.constant 0 : i32
    return %c0_i32, %c0_i32_0 : i32, i32
  }
  func.func @transform_3(%arg0: i32) -> (i32, i32) {
    %c0_i32 = arith.constant 0 : i32
    %c0_i32_0 = arith.constant 0 : i32
    %c0_i32_1 = arith.constant 0 : i32
    return %c0_i32, %c0_i32_0 : i32, i32
  }
  func.func @transform_4(%arg0: i32) -> (i32, i32) {
    %c0_i32 = arith.constant 0 : i32
    %c0_i32_0 = arith.constant 0 : i32
    %c0_i32_1 = arith.constant 0 : i32
    return %c0_i32, %c0_i32_0 : i32, i32
  }
  func.func @transform_5(%arg0: i32) -> (i32, i32) {
    %c0_i32 = arith.constant 0 : i32
    %c0_i32_0 = arith.constant 0 : i32
    %c0_i32_1 = arith.constant 0 : i32
    return %c0_i32, %c0_i32_0 : i32, i32
  }
  func.func @transform_6(%arg0: i32) -> (i32, i32, i32) {
    %c0_i32 = arith.constant 0 : i32
    %c0_i32_0 = arith.constant 0 : i32
    %c0_i32_1 = arith.constant 0 : i32
    %c0_i32_2 = arith.constant 0 : i32
    return %c0_i32, %c0_i32_0, %c0_i32_1 : i32, i32, i32
  }
  func.func @transform_7(%arg0: i32) -> (i32, i32, i32) {
    %c0_i32 = arith.constant 0 : i32
    %c0_i32_0 = arith.constant 0 : i32
    %c0_i32_1 = arith.constant 0 : i32
    %c0_i32_2 = arith.constant 0 : i32
    return %c0_i32, %c0_i32_0, %c0_i32_1 : i32, i32, i32
  }
  func.func @transform_8(%arg0: i32) -> (i32, i32, i32) {
    %c0_i32 = arith.constant 0 : i32
    %c0_i32_0 = arith.constant 0 : i32
    %c0_i32_1 = arith.constant 0 : i32
    %c0_i32_2 = arith.constant 0 : i32
    return %c0_i32, %c0_i32_0, %c0_i32_1 : i32, i32, i32
  }
  func.func @transform_9(%arg0: i32) -> (i32, i32, i32) {
    %c0_i32 = arith.constant 0 : i32
    %c0_i32_0 = arith.constant 0 : i32
    %c0_i32_1 = arith.constant 0 : i32
    %c0_i32_2 = arith.constant 0 : i32
    return %c0_i32, %c0_i32_0, %c0_i32_1 : i32, i32, i32
  }
  func.func @transform_10(%arg0: i32) -> (i32, i32, i32) {
    %c0_i32 = arith.constant 0 : i32
    %c0_i32_0 = arith.constant 0 : i32
    %c0_i32_1 = arith.constant 0 : i32
    %c0_i32_2 = arith.constant 0 : i32
    return %c0_i32, %c0_i32_0, %c0_i32_1 : i32, i32, i32
  }
  func.func @transform_11(%arg0: i32) -> (i32, i32, i32) {
    %c0_i32 = arith.constant 0 : i32
    %c0_i32_0 = arith.constant 0 : i32
    %c0_i32_1 = arith.constant 0 : i32
    %c0_i32_2 = arith.constant 0 : i32
    return %c0_i32, %c0_i32_0, %c0_i32_1 : i32, i32, i32
  }
  func.func @transform_12(%arg0: i32) -> (i32, i32, i32) {
    %c0_i32 = arith.constant 0 : i32
    %c0_i32_0 = arith.constant 0 : i32
    %c0_i32_1 = arith.constant 0 : i32
    %c0_i32_2 = arith.constant 0 : i32
    return %c0_i32, %c0_i32_0, %c0_i32_1 : i32, i32, i32
  }
  func.func @transform_13(%arg0: i32) -> (i32, i32, i32) {
    %c0_i32 = arith.constant 0 : i32
    %c0_i32_0 = arith.constant 0 : i32
    %c0_i32_1 = arith.constant 0 : i32
    %c0_i32_2 = arith.constant 0 : i32
    return %c0_i32, %c0_i32_0, %c0_i32_1 : i32, i32, i32
  }
  func.func @transform_14(%arg0: i32) -> (i32, i32, i32) {
    %c0_i32 = arith.constant 0 : i32
    %c0_i32_0 = arith.constant 0 : i32
    %c0_i32_1 = arith.constant 0 : i32
    %c0_i32_2 = arith.constant 0 : i32
    return %c0_i32, %c0_i32_0, %c0_i32_1 : i32, i32, i32
  }
  func.func @transform_15(%arg0: i32) -> (i32, i32, i32) {
    %c0_i32 = arith.constant 0 : i32
    %c0_i32_0 = arith.constant 0 : i32
    %c0_i32_1 = arith.constant 0 : i32
    %c0_i32_2 = arith.constant 0 : i32
    return %c0_i32, %c0_i32_0, %c0_i32_1 : i32, i32, i32
  }
  func.func @transform_16(%arg0: i32) -> (i32, i32, i32) {
    %c0_i32 = arith.constant 0 : i32
    %c0_i32_0 = arith.constant 0 : i32
    %c0_i32_1 = arith.constant 0 : i32
    %c0_i32_2 = arith.constant 0 : i32
    return %c0_i32, %c0_i32_0, %c0_i32_1 : i32, i32, i32
  }
  func.func @transform_17(%arg0: i32) -> (i32, i32, i32) {
    %c0_i32 = arith.constant 0 : i32
    %c0_i32_0 = arith.constant 0 : i32
    %c0_i32_1 = arith.constant 0 : i32
    %c0_i32_2 = arith.constant 0 : i32
    return %c0_i32, %c0_i32_0, %c0_i32_1 : i32, i32, i32
  }
  func.func @transform_18(%arg0: i32) -> (i32, i32, i32) {
    %c0_i32 = arith.constant 0 : i32
    %c0_i32_0 = arith.constant 0 : i32
    %c0_i32_1 = arith.constant 0 : i32
    return %arg0, %c0_i32, %c0_i32_0 : i32, i32, i32
  }
}

</mosaic_0001>

<bundles_post_ra>
// kernel: tpu_custom_call.1
= control target key start
LH: loop header
LB: loop body
LE: loop exit
PB: predicated region body
PF: predicated region fallthrough
CT: control target
= control target key end

     0   :  { %s4712_s0 = inlined_call_operand.hbm [shape: f32[2,8,16], index: 0, kind: input, shape index: {}]   ;;  %s4713_s1 = inlined_call_operand.vmem [shape: f32[2,1,32], index: 1, kind: input, shape index: {}]   ;;  %s4714_s2 = inlined_call_operand.hbm [shape: f32[16,32], index: 2, kind: input, shape index: {}]   ;;  %s4715_s3 = inlined_call_operand.hbm [shape: f32[1,32], index: 3, kind: input, shape index: {}]   ;;  %s4716_s4 = inlined_call_operand.hbm [shape: f32[1,32], index: 4, kind: input, shape index: {}]   ;;  %s4717_s5 = inlined_call_operand.hbm [shape: f32[1,32], index: 5, kind: input, shape index: {}]   ;;  %s4718_s6 = inlined_call_operand.vmem [shape: f32[2,32,96], index: 6, kind: input, shape index: {}]   ;;  %s4719_s7 = inlined_call_operand.vmem [shape: f32[2,1,96], index: 7, kind: input, shape index: {}]   ;;  %s4720_s8 = inlined_call_operand.vmem [shape: f32[2,32,32], index: 8, kind: input, shape index: {}]   ;;  %s4721_s9 = inlined_call_operand.vmem [shape: f32[2,1,32], index: 9, kind: input, shape index: {}]   ;;  %s4722_s10 = inlined_call_operand.vmem [shape: f32[2,32,64], index: 10, kind: input, shape index: {}]   ;;  %s4723_s11 = inlined_call_operand.vmem [shape: f32[2,1,64], index: 11, kind: input, shape index: {}]   ;;  %s4724_s12 = inlined_call_operand.vmem [shape: f32[2,64,32], index: 12, kind: input, shape index: {}]   ;;  %s4725_s13 = inlined_call_operand.vmem [shape: f32[2,1,32], index: 13, kind: input, shape index: {}]   ;;  %s4726_s14 = inlined_call_operand.vmem [shape: f32[2,1,32], index: 14, kind: input, shape index: {}]   ;;  %s4727_s15 = inlined_call_operand.vmem [shape: f32[2,1,32], index: 15, kind: input, shape index: {}]   ;;  %s4728_s16 = inlined_call_operand.vmem [shape: f32[2,1,32], index: 16, kind: input, shape index: {}]   ;;  %s4729_s17 = inlined_call_operand.vmem [shape: f32[2,1,32], index: 17, kind: input, shape index: {}]   ;;  %s4730_s18 = inlined_call_operand.hbm [shape: f32[2,1,32], index: 18, kind: output, shape index: {}]  }
   0x1   :  { %4760 = sst [smem:[#allocation18_spill]] %s4712_s0 }
   0x2   :  { %4761 = sst [smem:[#allocation19_spill]] %s4713_s1 }
   0x3   :  { %4762 = sst [smem:[#allocation20_spill]] %s4714_s2 }
   0x4   :  { %4763 = sst [smem:[#allocation21_spill]] %s4715_s3 }
   0x5   :  { %4764 = sst [smem:[#allocation22_spill]] %s4716_s4 }
   0x6   :  { %4765 = sst [smem:[#allocation23_spill]] %s4717_s5 }
   0x7   :  { %4766 = sst [smem:[#allocation24_spill]] %s4718_s6 }
   0x8   :  { %4767 = sst [smem:[#allocation25_spill]] %s4719_s7 }
   0x9   :  { %4768 = sst [smem:[#allocation26_spill]] %s4723_s11 }
   0xa   :  { %4769 = sst [smem:[#allocation27_spill]] %s4724_s12 }
   0xb   :  { %4770 = sst [smem:[#allocation28_spill]] %s4725_s13 }
   0xc   :  { %4771 = sst [smem:[#allocation29_spill]] %s4726_s14 }
   0xd   :  { %4772 = sst [smem:[#allocation30_spill]] %s4727_s15 }
   0xe   :  { %4773 = sst [smem:[#allocation31_spill]] %s4728_s16 }
   0xf   :  { %4774 = sst [smem:[#allocation32_spill]] %s4729_s17 }
  0x10   :  { %4775 = sst [smem:[#allocation33_spill]] %s4730_s18 }
  0x11   :  { %23 = vsyncpa [#allocation5], 0 }
  0x12   :  { %25 = vsyncpa [#allocation5 + $0x1], 0 }
  0x13   :  { %26 = vsyncpa [#allocation8], 0 }
  0x14   :  { %27 = vsyncpa [#allocation11], 0 }
  0x15   :  { %28 = vsyncpa [#allocation6], 0 }
  0x16   :  { %30 = vsyncpa [#allocation6 + $0x1], 0  ;;  %s4042_s27 = smov 0   ;;  %s4044_s28 = smov 0  }
  0x17   :  { %s4046_s29 = smov 0   ;;  %s4048_s30 = smov 0  }
  0x18 LB: > { %s3922_s0 = smov [#allocation7]   ;;  %s4063_s1 = sadd.s32 4294967295, %s3920_s30   ;;  %s3920_s30 = sphi %s4048_s30, %s4826_s30   ;;  %s3916_s29 = sphi %s4046_s29, %s4825_s29   ;;  %s3912_s28 = sphi %s4044_s28, %s4824_s28   ;;  %s3908_s27 = sphi %s4042_s27, %s4823_s27  }
  0x19   : > { %s467_s19 = sshll.u32 %s3922_s0, 4  ;;  %p3121_p0 = scmp.ge.s32.totalorder %s3920_s30, 1  ;;  %s4068_s19 = int_to_ptr.vmem [resolvable:$true] %s467_s19 }
  0x1a   : > { %p4741_p1 = scmp.eq.s32.totalorder %s4063_s1, 0  ;;  %p455_p2 = scmp.lt.s32.totalorder %s3920_s30, 3 }
  0x1b   : > { %s3923_s21 = smov [#allocation10]   ;;  %s3924_s23 = smov [#allocation9]  }
  0x1c   : > { %p4070_p3 = pnand %p3121_p0, %p455_p2  ;;  %s492_s22 = sshll.u32 %s3923_s21, 4  ;;  %s4083_s22 = int_to_ptr.vmem [resolvable:$true] %s492_s22 }
  0x1d   : > { %s481_s24 = sshll.u32 %s3924_s23, 4  ;;  %s4778_s0 = sld [smem:[#allocation20_spill]]  ;;  %s4085_s24 = int_to_ptr.vmem [resolvable:$true] %s481_s24 }
  0x1e   : > { %s4776_s20 = scalar_select %p4070_p3, 1, 0 }
  0x1f   : > { %p3576_p5 = pneg %p4070_p3 }
  0x21   : > { %p4079_p6 = pnand %p3576_p5, %p4741_p1 }
  0x23   : > { %s3704_s18 = scalar_lea.hbm %s4778_s0, 256  ;;  %p4095_p8 = pneg %p4079_p6 }
  0x24   : > { %p3705_p7 = scmp.ne.s32.totalorder %s4778_s0, %s3704_s18  ;;  %p3711_p11 = scmp.lt.u32.totalorder %s3704_s18, %s4778_s0 }
  0x26   : > { %p3707_p9 = pnand %p4095_p8, %p3705_p7 }
  0x28   : > { %p3708_p10 = pneg %p3707_p9 }
  0x2a   : > { %p3713_p12 = pnand %p3711_p11, %p3708_p10 }
  0x2c   : > { %3716 = shalt.err (!%p3713_p12)
}
  0x2d   : > { %s3717_s16 = scalar_lea.vmem %s4068_s19, 256  ;;  %p3725_p5 = scmp.lt.s32.totalorder %s4068_s19, %s4068_s19 }
  0x2e   : > { %p3718_p13 = scmp.ne.s32.totalorder %s4068_s19, %s3717_s16  ;;  %p3726_p4 = scmp.lt.s32.totalorder %s3717_s16, %s3717_s16 }
  0x30   : > { %p3720_p0 = pnand %p3718_p13, %p4095_p8  ;;  %p3727_p7 = por %p3726_p4, %p3725_p5 }
  0x32   : > { %p3721_p2 = pneg %p3720_p0 }
  0x34   : > { %p3728_p9 = pnand %p3727_p7, %p3721_p2 }
  0x36   : > { %3731 = shalt.err (!%p3728_p9)
}
  0x37   : > { %s3925_s17 = smov 128   ;;  %s3926_s13 = smov 8  }
  0x38   : > { %3579 = dma.hbm_to_vmem [thread:$0]  (!%p4079_p6), %s4778_s0, 256, %s4068_s19, [#allocation8], %s3925_s17, %s3925_s17, %s3926_s13  }
  0x39   : > { %s4780_s4 = sld [smem:[#allocation22_spill]] }
  0x3f   : > { %s3732_s11 = scalar_lea.hbm %s4780_s4, 16 }
  0x40   : > { %p3733_p4 = scmp.ne.s32.totalorder %s4780_s4, %s3732_s11  ;;  %p3739_p12 = scmp.lt.u32.totalorder %s3732_s11, %s4780_s4 }
  0x42   : > { %p3735_p10 = pnand %p3733_p4, %p4095_p8 }
  0x44   : > { %p3736_p11 = pneg %p3735_p10 }
  0x46   : > { %p3741_p13 = pnand %p3739_p12, %p3736_p11 }
  0x48   : > { %3744 = shalt.err (!%p3741_p13)
}
  0x49   : > { %s3745_s19 = scalar_lea.vmem %s4083_s22, 16  ;;  %s3752_s14 = scalar_lea.vmem %s4083_s22, 32 }
  0x4a   : > { %p3746_p0 = scmp.ne.s32.totalorder %s4083_s22, %s3745_s19  ;;  %p3753_p7 = scmp.lt.s32.totalorder %s4083_s22, %s4083_s22 }
  0x4b   : > { %p3754_p9 = scmp.lt.s32.totalorder %s3752_s14, %s3745_s19 }
  0x4c   : > { %p3748_p2 = pnand %p3746_p0, %p4095_p8 }
  0x4d   : > { %p3755_p4 = por %p3754_p9, %p3753_p7 }
  0x4e   : > { %p3749_p5 = pneg %p3748_p2 }
  0x50   : > { %p3756_p10 = pnand %p3755_p4, %p3749_p5 }
  0x52   : > { %3759 = shalt.err (!%p3756_p10)
}
  0x53   : > { %3585 = dma.hbm_to_vmem [thread:$0]  (!%p4079_p6), %s4780_s4, 16, %s4083_s22, [#allocation11]  }
  0x54   : > { %s4781_s3 = sld [smem:[#allocation21_spill]] }
  0x5a   : > { %s3760_s13 = scalar_lea.hbm %s4781_s3, 16 }
  0x5b   : > { %p3761_p11 = scmp.ne.s32.totalorder %s4781_s3, %s3760_s13  ;;  %p3767_p0 = scmp.lt.u32.totalorder %s3760_s13, %s4781_s3 }
  0x5d   : > { %p3763_p12 = pnand %p3761_p11, %p4095_p8 }
  0x5f   : > { %p3764_p13 = pneg %p3763_p12 }
  0x61   : > { %p3769_p2 = pnand %p3767_p0, %p3764_p13 }
  0x63   : > { %3772 = shalt.err (!%p3769_p2)
}
  0x64   : > { %s3773_s22 = scalar_lea.vmem %s4085_s24, 16  ;;  %s3780_s16 = scalar_lea.vmem %s4085_s24, 32 }
  0x65   : > { %p3774_p5 = scmp.ne.s32.totalorder %s4085_s24, %s3773_s22  ;;  %p3781_p4 = scmp.lt.s32.totalorder %s4085_s24, %s4085_s24 }
  0x66   : > { %p3782_p10 = scmp.lt.s32.totalorder %s3780_s16, %s3773_s22 }
  0x67   : > { %p3776_p7 = pnand %p3774_p5, %p4095_p8 }
  0x68   : > { %p3783_p11 = por %p3782_p10, %p3781_p4 }
  0x69   : > { %p3777_p9 = pneg %p3776_p7 }
  0x6b   : > { %p3784_p12 = pnand %p3783_p11, %p3777_p9 }
  0x6d   : > { %3787 = shalt.err (!%p3784_p12)
}
  0x6e   : > { %3582 = dma.hbm_to_vmem [thread:$0]  (!%p4079_p6), %s4781_s3, 16, %s4085_s24, [#allocation8]  }
  0x6f   : > { %s3927_s11 = smov [#allocation12]   ;;  %s4782_s5 = sld [smem:[#allocation23_spill]] }
  0x70   : > { %s503_s12 = sshll.u32 %s3927_s11, 4  ;;  %s504_s12 = int_to_ptr.vmem [resolvable:$true] %s503_s12 }
  0x75   : > { %s3788_s13 = scalar_lea.hbm %s4782_s5, 16 }
  0x76   : > { %p3789_p13 = scmp.ne.s32.totalorder %s4782_s5, %s3788_s13  ;;  %p3795_p5 = scmp.lt.u32.totalorder %s3788_s13, %s4782_s5 }
  0x78   : > { %p3791_p0 = pnand %p3789_p13, %p4095_p8 }
  0x7a   : > { %p3792_p2 = pneg %p3791_p0 }
  0x7c   : > { %p3797_p7 = pnand %p3795_p5, %p3792_p2 }
  0x7e   : > { %3800 = shalt.err (!%p3797_p7)
}
  0x7f   : > { %s3801_s24 = scalar_lea.vmem %s504_s12, 16  ;;  %s3808_s22 = scalar_lea.vmem %s504_s12, 32 }
  0x80   : > { %p3802_p9 = scmp.ne.s32.totalorder %s504_s12, %s3801_s24  ;;  %p3809_p11 = scmp.lt.s32.totalorder %s504_s12, %s504_s12 }
  0x81   : > { %p3810_p12 = scmp.lt.s32.totalorder %s3808_s22, %s3801_s24 }
  0x82   : > { %p3804_p4 = pnand %p3802_p9, %p4095_p8 }
  0x83   : > { %p3811_p1 = por %p3810_p12, %p3809_p11 }
  0x84   : > { %p3805_p10 = pneg %p3804_p4 }
  0x86   : > { %p3812_p3 = pnand %p3811_p1, %p3805_p10 }
  0x88   : > { %3815 = shalt.err (!%p3812_p3)
}
  0x89   : > { %3588 = dma.hbm_to_vmem [thread:$0]  (!%p4079_p6), %s4782_s5, 16, %s504_s12, [#allocation11]  }
  0x8a   : > { %s3120_s21 = sadd.s32 4294967294, %s3920_s30   ;;  %s4184_s2 = sadd.s32 1, %s3920_s30  }
  0x8b   : > { %s40_s14 = ssub.s32 %s3920_s30, %s4184_s2  ;;  %s43_s11 = sadd.s32 1, %s3916_s29 }
  0x8c   : > { %p41_p1 = scmp.eq.s32.totalorder %s40_s14, 0  ;;  %p50_p3 = scmp.ne.s32.totalorder %s3916_s29, %s3912_s28 }
  0x8d   : > { %p51_p8 = scmp.eq.s32.totalorder %s3920_s30, 0  ;;  %p56_p13 = scmp.ne.s32.totalorder %s3912_s28, %s3908_s27 }
  0x8e   : > { %s4195_s15 = scalar_select %p41_p1, %s3916_s29, %s43_s11  }
  0x8f   : > { %p4197_p0 = por %p51_p8, %p50_p3  ;;  %p4784_p2 = scmp.eq.s32.totalorder %s4063_s1, 0 }
  0x90   : > { %p442_p5 = scmp.eq.s32.totalorder %s4063_s1, 1  ;;  %p448_p7 = scmp.eq.s32.totalorder %s3120_s21, 1 }
  0x91   : > { %p4203_p6 = por %p4784_p2, %p56_p13  ;;  %p3601_p9 = scmp.lt.s32.totalorder %s3920_s30, 2 }
  0x92   : > { %s550_s13 = sand.u32 1, %s3916_s29   ;;  %p4210_p4 = por %p442_p5, %p50_p3 }
  0x93   : > { %p4214_p10 = por %p448_p7, %p56_p13  ;;  %s3127_s26 = sshll.u32 %s550_s13, 3 }
  0x94   : > { %s4786_s18 = scalar_select %p4210_p4, 1, 0 }
  0x95   : > { %s4787_s25 = scalar_select %p4214_p10, 1, 0 }
  0x96   : > { %s3128_s23 = sshll.u32 %s3920_s30, 7  ;;  %s4788_s16 = sld [smem:[#allocation18_spill]] }
  0x97   : > { %s554_s21 = scalar_lea.vmem [#allocation4], %s3127_s26  ;;  %p4228_p11 = pnand %p3601_p9, %p4197_p0 }
  0x98   : > { %s561_s14 = sshll.u32 %s554_s21, 4  ;;  %s551_s0 = scalar_lea.sflag [#allocation5], %s550_s13  ;;  %s4224_s14 = int_to_ptr.vmem [resolvable:$true] %s561_s14 }
  0x99   : > { %p3818_p1 = pneg %p4228_p11 }
  0x9c   : > { %s4222_s19 = scalar_lea.hbm %s4788_s16, %s3128_s23  ;;  %s3821_s24 = scalar_lea.hbm %s4788_s16, 256 }
  0x9d   : > { %s3816_s3 = scalar_lea.hbm %s4222_s19, 128  ;;  %p3822_p13 = scmp.lt.u32.totalorder %s4222_s19, %s4788_s16 }
  0x9e   : > { %p3817_p12 = scmp.ne.s32.totalorder %s4222_s19, %s3816_s3  ;;  %p3823_p0 = scmp.lt.u32.totalorder %s3821_s24, %s3816_s3 }
  0x9f   : > { %p3825_p5 = scmp.lt.u32.totalorder %s3816_s3, %s4222_s19 }
  0xa0   : > { %p3819_p3 = pnand %p3818_p1, %p3817_p12  ;;  %p3824_p2 = por %p3823_p0, %p3822_p13 }
  0xa2   : > { %p3820_p8 = pneg %p3819_p3  ;;  %p3826_p7 = por %p3825_p5, %p3824_p2 }
  0xa4   : > { %p3827_p9 = pnand %p3826_p7, %p3820_p8 }
  0xa6   : > { %3830 = shalt.err (!%p3827_p9)
}
  0xa7   : > { %s3831_s13 = scalar_lea.vmem %s4224_s14, 128  ;;  %s3928_s21 = smov [#allocation4]  }
  0xa8   : > { %p3832_p12 = scmp.ne.s32.totalorder %s4224_s14, %s3831_s13  ;;  %s3836_s26 = sshll.u32 %s3928_s21, 4  ;;  %s3837_s26 = int_to_ptr.vmem [resolvable:$false] %s3836_s26 }
  0xa9   : > { %s3838_s23 = scalar_lea.vmem %s3837_s26, 256  ;;  %p3839_p4 = scmp.lt.s32.totalorder %s4224_s14, %s3837_s26 }
  0xaa   : > { %p3834_p3 = pnand %p3832_p12, %p3818_p1  ;;  %p3840_p13 = scmp.lt.s32.totalorder %s3838_s23, %s3831_s13 }
  0xac   : > { %p3835_p10 = pneg %p3834_p3  ;;  %p3841_p0 = por %p3840_p13, %p3839_p4 }
  0xae   : > { %p3842_p2 = pnand %p3841_p0, %p3835_p10 }
  0xb0   : > { %3845 = shalt.err (!%p3842_p2)
}
  0xb1   : > { %3592 = dma.hbm_to_vmem [thread:$0]  (!%p4228_p11), %s4222_s19, 128, %s4224_s14, %s551_s0  }
  0xb2   : > { %p4790_p8 = scmp.ne.s32.totalorder %s4776_s20, 0 }
  0xb3   : > { %s4260_s3 = sand.u32 (!%p4790_p8), 1, %s3912_s28  }
  0xb4   : > { %576 = sbr.rel (%p4790_p8) target bundleno = 6258 (0x1872), region = 92  ;;  %s3130_s24 = sshll.u32 (!%p4790_p8), %s4260_s3, 3 }
  0xb5   : > { %s579_s17 = scalar_lea.sflag (!%p4790_p8), [#allocation5], %s4260_s3  ;;  %s582_s22 = scalar_lea.vmem (!%p4790_p8), [#allocation4], %s3130_s24 }
  0xbb   : > { %3891 = dma.done.wait (%p4203_p6), %s579_s17, 128  }
  0xbc   : > { %3893 = vsyncadd (%p4203_p6), %s579_s17, 4294967168  ;;  %p4791_p4 = scmp.eq.s32.totalorder %s4063_s1, 0 }
  0xbe   : > { %3895 = dma.done.wait (%p4791_p4), [#allocation8], 272   ;;  %p4792_p10 = pmov %p4791_p4 }
  0xbf   : > { %p4793_p11 = pmov %p4791_p4 }
  0xc0   : > { %3897 = vsyncadd (%p4792_p10), [#allocation8], 4294967024 }
  0xc1   : > { %3899 = dma.done.wait (%p4793_p11), [#allocation11], 32   ;;  %p4794_p1 = pmov %p4791_p4 }
  0xc2   : > { %v3929_v0 = vmov 0.0|0.0   ;;  %vm3930_vm0 = vmmov 0   ;;  %v3931_v1 = vmov 0.0   ;;  %v657_v2 = vld [vmem:[#allocation7] sm:$0xff]  ;;  %v658_v3 = vld [vmem:[#allocation7 + $0x8] sm:$0xff]  ;;  %v656_v5 = vld [vmem:[%s582_s22] sm:$0xff] }
  0xc3   : > { %3901 = vsyncadd (%p4794_p1), [#allocation11], 4294967264  ;;  %3493 = vmatprep.subr.bf16.mxu0 %v3929_v0  ;;  %3306 = vmatprep.mubr.msk.f32.mxu0 %vm3930_vm0, %v3931_v1  ;;  %v3494_v4 = vpack.c.bf16 %v658_v3, %v657_v2  ;;  %vm666_vm1 = vcmask 130048   ;;  %v3135_v6 = vld [vmem:[#allocation9] ss:$0 sm:$0xff]  ;;  %vm742_vm2 = vcmask 261120  }
  0xc4   : > { %3325 = vmatprep.subr.mxu1 %v3931_v1  ;;  %3327 = vmatprep.mubr.msk.f32.mxu1 %vm3930_vm0, %v3931_v1  ;;  %s4795_s6 = sld [smem:[#allocation24_spill]]  ;;  %p653_p6 = scmp.lt.s32.totalorder %s4063_s1, 1  ;;  %v3137_v26 = vld [vmem:[#allocation10] ss:$0 sm:$0xff]  ;;  %v3138_v28 = vld [vmem:[#allocation12] ss:$0 sm:$0xff] }
  0xc5   : > { %3495 = vmatpush3.bf16.msra.mxu0 %v3494_v4  ;;  %s4796_s17 = sld [smem:[#allocation19_spill]]  ;;  %s4797_s7 = sld [smem:[#allocation25_spill]]  ;;  %vm863_vm3 = vcmask 785408   ;;  %vm870_vm4 = vcmask 64512   ;;  %vm1207_vm5 = vcmask 130112   ;;  %vm1382_vm6 = vcmask 195712  }
  0xc6   : > { %3496 = vmatprep.subr.bf16.mxu0 %v3929_v0  ;;  %s654_s26 = scalar_select %p653_p6, %s4063_s1, 1  ;;  %vm1557_vm7 = vcmask 261312   ;;  %vm1774_vm8 = vcmask 523264   ;;  %vm2992_vm9 = vcmask 253952  }
  0xc7   : > { %s4748_s12 = smov 64   ;;  %s4757_s19 = smov 96  }
  0xc8   : > { %3307 = vmatmul.mubr.msk.f32.vlgmr.msra.gmra.mrb[0].mxu0 %vm666_vm1, %v656_v5  ;;  %s4758_s14 = smov 88   ;;  %s4756_s11 = smov 120  }
  0xc9   : > { %3317 = vmatprep.mubr.msk.f32.mxu0 %vm3930_vm0, %v3931_v1  ;;  %s4754_s13 = smov 80   ;;  %s4755_s21 = smov 112  }
  0xca   : > { %v779_v16 = vld [vmem:[%s4795_s6] sm:$0xff]  ;;  %v780_v17 = vld [vmem:[%s4795_s6 + $0x8] sm:$0xff]  ;;  %v781_v19 = vld [vmem:[%s4795_s6 + $0x10] sm:$0xff]  ;;  %s4750_s23 = smov 104   ;;  %s4747_s24 = smov 48  }
  0xcb   : > { %v3497_v18 = vpack.c.bf16 %v780_v17, %v779_v16  ;;  %v782_v20 = vld [vmem:[%s4795_s6 + $0x18] sm:$0xff]  ;;  %s655_s22 = scalar_lea.vmem %s4796_s17, %s654_s26  ;;  %v3140_v33 = vld [vmem:[%s4797_s7] ss:$0 sm:$0xff]  ;;  %s4749_s26 = smov 72  }
  0xcc   : > { %v3500_v21 = vpack.c.bf16 %v782_v20, %v781_v19  ;;  %v3139_v30 = vld [vmem:[%s655_s22] ss:$0 sm:$0xff]  ;;  %s4746_s17 = smov 40   ;;  %s4745_s22 = smov 56  }
  0xcd   : > { %3498 = vmatpush3.bf16.msra.mxu0 %v3497_v18  ;;  %s4753_s20 = smov 8   ;;  %s4798_s0 = sld [smem:[#allocation27_spill]] }
  0xce   : > { %3499 = vmatprep.subr.bf16.mxu0 %v3929_v0  ;;  %s4811_s4 = smov 72   ;;  %s4818_s5 = smov 24  }
  0xcf   : > { %p4820_p7 = scmp.ne.s32.totalorder %s4786_s18, 0 }
  0xd1   : > { %3501 = vmatpush3.bf16.msra.mxu0 %v3500_v21 }
  0xd2   : > { %3320 = vmatprep.subr.mxu0 %v3931_v1 }
 0x19b   : > { %v736_v7 = vpop.f32.mrb[0].mxu0 }
 0x19c   : > { %v737_v8 = vadd.f32 %v3135_v6, %v736_v7  ;;  %v3308_v9 = vpop.f32.mrb[1].mxu0 }
 0x19e   : > { %v743_v10 = vsel %vm742_vm2, %v737_v8, 0.0 }
 0x19f   : > { %744 = vadd.xlane.f32.xlu0 %v743_v10 }
 0x22c   : > { %v745_v11 = vpop.xlane.xlu0 %744 }
 0x22d   : > { %v747_v12 = vmul.f32 0.03125, %v745_v11 }
 0x22f   : > { %v748_v13 = vsub.f32 %v737_v8, %v747_v12 }
 0x231   : > { %v749_v14 = vmul.f32 %v748_v13, %v748_v13 }
 0x233   : > { %v750_v15 = vsel %vm742_vm2, %v749_v14, 0.0 }
 0x234   : > { %751 = vadd.xlane.f32.xlu0 %v750_v15 }
 0x2c1   : > { %v752_v22 = vpop.xlane.xlu0 %751 }
 0x2c2   : > { %v753_v23 = vmul.f32 0.03125, %v752_v22 }
 0x2c4   : > { %v754_v24 = vadd.f32 1e-05, %v753_v23 }
 0x2c6   : > { %3662 = vrsqrt.f32 %v754_v24 }
 0x2d0   : > { %v3663_v25 = vpop.eup %3662 }
 0x2d1   : > { %v756_v27 = vmul.f32 %v3663_v25, %v748_v13 }
 0x2d3   : > { %v763_v29 = vmul.f32 %v3137_v26, %v756_v27 }
 0x2d5   : > { %v770_v31 = vadd.f32 %v3138_v28, %v763_v29 }
 0x2d7   : > { %v4306_v32 = vadd.f32 %v3139_v30, %v770_v31 }
 0x2d9   : > { %3318 = vmatmul.mubr.msk.f32.vlgmr.msra.gmra.mrb[2].mxu0 %vm742_vm2, %v4306_v32 }
 0x2da   : > { %3322 = vmatprep.mubr.msk.f32.mxu0 %vm3930_vm0, %v3931_v1 }
 0x3ac   : > { %v859_v34 = vpop.f32.mrb[2].mxu0 }
 0x3ad   : > { %v860_v35 = vadd.f32 %v3140_v33, %v859_v34  ;;  %v3319_v36 = vpop.f32.mrb[3].mxu0 }
 0x3ae   : > { %v1561_v36 = vld [vmem:[%s4720_s8 + $0x8] sm:$0xff] }
 0x3af   : > { %864 = vst.msk [vmem:[#allocation2] sm:$0xff] %vm863_vm3, %v860_v35  ;;  %v1560_v35 = vld [vmem:[%s4720_s8] sm:$0xff] }
 0x3b6   : > { %v4316_v37 = vld [vmem:[#allocation2] sm:$0xff] }
 0x3b7   : > { %957 = vrot.lane.b32.xlu0 %v4316_v37, %s4748_s12  ;;  %868 = vrot.lane.b32.xlu1 %v4316_v37, %s4757_s19  ;;  %v866_v38 = vmul.f32 0.35355338, %v4316_v37  ;;  %s4751_s12 = smov 24   ;;  %s4804_s19 = sld [smem:[#allocation32_spill]] }
 0x3bb   : > { %1040 = vrot.lane.b32.xlu0 %v4316_v37, %s4758_s14  ;;  %s4809_s14 = smov 80  }
 0x3bf   : > { %1037 = vrot.lane.b32.xlu0 %v866_v38, %s4756_s11  ;;  %s4808_s11 = smov 112  }
 0x429   : > { %v958_v39 = vpop.permute.xlu0 %957  ;;  %v869_v40 = vpop.permute.xlu1 %868 }
 0x42a   : > { %3321 = vmatpush3.xpose.msk.msra.mxu0 %vm870_vm4, %v869_v40  ;;  %3326 = vmatpush3.msra.mxu1 %v958_v39  ;;  %v1563_v39 = vld [vmem:[%s4720_s8 + $0x18] sm:$0xff] }
 0x42b   : > { %3330 = vmatprep.subr.mxu1 %v3931_v1  ;;  %3335 = vmatprep.subr.mxu0 %v3931_v1 }
 0x42d   : > { %3323 = vmatmul.mubr.msk.f32.vlgmr.msra.gmra.mrb[4].mxu0 %vm870_vm4, %v866_v38  ;;  %v1041_v49 = vpop.permute.xlu0 %1040 }
 0x42e   : > { %3337 = vmatprep.mubr.msk.f32.mxu0 %vm3930_vm0, %v3931_v1 }
 0x431   : > { %v1038_v50 = vpop.permute.xlu0 %1037 }
 0x500   : > { %v942_v41 = vpop.f32.mrb[4].mxu0 }
 0x501   : > { %v3324_v42 = vpop.f32.mrb[5].mxu0  ;;  %v946_v43 = vsel %vm870_vm4, %v942_v41, -inf }
 0x502   : > { %947 = vmax.xlane.f32.xlu1 %v946_v43 }
 0x513   : > { %1215 = vrot.lane.b32.xlu1 %v4316_v37, %s4754_s13  ;;  %s4806_s13 = smov 96  }
 0x58f   : > { %v948_v44 = vpop.xlane.xlu1 %947 }
 0x590   : > { %v949_v45 = vsub.f32 %v942_v41, %v948_v44 }
 0x592   : > { %v950_v46 = vmul.f32 1.442695, %v949_v45 }
 0x593   : > { %v1216_v55 = vpop.permute.xlu1 %1215 }
 0x594   : > { %3664 = vpow2.f32 %v950_v46 }
 0x59e   : > { %v3665_v47 = vpop.eup %3664 }
 0x59f   : > { %v952_v48 = vsel %vm870_vm4, %v3665_v47, 0.0 }
 0x5a0   : > { %953 = vadd.xlane.f32.xlu0 %v952_v48 }
 0x5b6   : > { %1212 = vrot.lane.b32.xlu0 %v866_v38, %s4755_s21  ;;  %s4799_s21 = sld [smem:[#allocation29_spill]] }
 0x5ba   : > { %1390 = vrot.lane.b32.xlu0 %v4316_v37, %s4749_s26  ;;  %s4803_s26 = sld [smem:[#allocation31_spill]] }
 0x5be   : > { %1387 = vrot.lane.b32.xlu0 %v866_v38, %s4750_s23  ;;  %v1562_v38 = vld [vmem:[%s4720_s8 + $0x10] sm:$0xff]  ;;  %s4801_s23 = sld [smem:[#allocation26_spill]] }
 0x5bf   : > { %v3506_v40 = vpack.c.bf16 %v1563_v39, %v1562_v38 }
 0x62d   : > { %v954_v51 = vpop.xlane.xlu0 %953 }
 0x62e   : > { %3666 = vrcp.f32 %v954_v51  ;;  %v3154_v51 = vld [vmem:[%s4721_s9] ss:$0 sm:$0xff] }
 0x631   : > { %v1213_v54 = vpop.permute.xlu0 %1212 }
 0x635   : > { %v1391_v56 = vpop.permute.xlu0 %1390 }
 0x638   : > { %v3667_v52 = vpop.eup %3666 }
 0x639   : > { %v956_v53 = vmul.f32 %v3667_v52, %v3665_v47  ;;  %v1388_v57 = vpop.permute.xlu0 %1387 }
 0x63b   : > { %3328 = vmatmul.mubr.msk.f32.vlgmr.msra.gmra.mrb[0].mxu1 %vm870_vm4, %v956_v53 }
 0x63c   : > { %3331 = vmatpush3.xpose.msk.msra.mxu1 %vm870_vm4, %v1041_v49  ;;  %3332 = vmatprep.mubr.msk.f32.mxu1 %vm3930_vm0, %v3931_v1 }
 0x63d   : > { %3340 = vmatprep.subr.mxu1 %v3931_v1 }
 0x63f   : > { %3333 = vmatmul.mubr.msk.f32.vlgmr.msra.gmra.mrb[2].mxu1 %vm870_vm4, %v1038_v50 }
 0x640   : > { %3341 = vmatpush3.xpose.msk.msra.mxu1 %vm870_vm4, %v1216_v55  ;;  %3342 = vmatprep.mubr.msk.f32.mxu1 %vm3930_vm0, %v3931_v1 }
 0x641   : > { %3350 = vmatprep.subr.mxu1 %v3931_v1 }
 0x643   : > { %3343 = vmatmul.mubr.msk.f32.vlgmr.msra.gmra.mrb[4].mxu1 %vm870_vm4, %v1213_v54 }
 0x644   : > { %3351 = vmatpush3.xpose.msk.msra.mxu1 %vm870_vm4, %v1391_v56  ;;  %3352 = vmatprep.mubr.msk.f32.mxu1 %vm3930_vm0, %v3931_v1 }
 0x645   : > { %3502 = vmatprep.subr.bf16.mxu1 %v3929_v0 }
 0x647   : > { %3353 = vmatmul.mubr.msk.f32.vlgmr.msra.gmra.mrb[6].mxu1 %vm870_vm4, %v1388_v57 }
 0x648   : > { %3368 = vmatprep.mubr.msk.f32.mxu1 %vm3930_vm0, %v3931_v1 }
 0x70e   : > { %v1029_v58 = vpop.f32.mrb[0].mxu1 }
 0x70f   : > { %1033 = vst.msk [vmem:[#allocation3] sm:$0xff] %vm870_vm4, %v1029_v58  ;;  %v3329_v59 = vpop.f32.mrb[1].mxu1 }
 0x712   : > { %v1112_v60 = vpop.f32.mrb[2].mxu1 }
 0x713   : > { %v3334_v61 = vpop.f32.mrb[3].mxu1  ;;  %v1116_v62 = vsel %vm870_vm4, %v1112_v60, -inf }
 0x714   : > { %1117 = vmax.xlane.f32.xlu0 %v1116_v62  ;;  %v1674_v62 = vld [vmem:[%s4722_s10] sm:$0xff] }
 0x716   : > { %v1287_v63 = vpop.f32.mrb[4].mxu1 }
 0x717   : > { %v3344_v2 = vpop.f32.mrb[5].mxu1  ;;  %v1291_v3 = vsel %vm870_vm4, %v1287_v63, -inf }
 0x718   : > { %1292 = vmax.xlane.f32.xlu1 %v1291_v3  ;;  %v1677_v3 = vld [vmem:[%s4722_s10 + $0x18] sm:$0xff] }
 0x71a   : > { %v1462_v4 = vpop.f32.mrb[6].mxu1 }
 0x71b   : > { %v3354_v5 = vpop.f32.mrb[7].mxu1  ;;  %v1466_v6 = vsel %vm870_vm4, %v1462_v4, -inf }
 0x71c   : > { %1467 = vmax.xlane.f32.xlu0 %v1466_v6  ;;  %v1759_v5 = vld [vmem:[%s4798_s0] sm:$0xff]  ;;  %v1760_v6 = vld [vmem:[%s4798_s0 + $0x8] sm:$0xff] }
 0x729   : > { %1302 = vrot.lane.b32.xlu1 %v4316_v37, %s4747_s24  ;;  %s4802_s24 = sld [smem:[#allocation28_spill]] }
 0x7a1   : > { %v1118_v7 = vpop.xlane.xlu0 %1117 }
 0x7a2   : > { %v1119_v8 = vsub.f32 %v1112_v60, %v1118_v7  ;;  %v1761_v7 = vld [vmem:[%s4798_s0 + $0x10] sm:$0xff] }
 0x7a4   : > { %v1120_v9 = vmul.f32 1.442695, %v1119_v8  ;;  %v3515_v8 = vpack.c.bf16 %v1760_v6, %v1759_v5 }
 0x7a5   : > { %v1293_v10 = vpop.xlane.xlu1 %1292 }
 0x7a6   : > { %3668 = vpow2.f32 %v1120_v9  ;;  %v1294_v11 = vsub.f32 %v1287_v63, %v1293_v10  ;;  %v1675_v63 = vld [vmem:[%s4722_s10 + $0x8] sm:$0xff]  ;;  %v1762_v9 = vld [vmem:[%s4798_s0 + $0x18] sm:$0xff] }
 0x7a7   : > { %v3509_v2 = vpack.c.bf16 %v1675_v63, %v1674_v62  ;;  %v3518_v10 = vpack.c.bf16 %v1762_v9, %v1761_v7 }
 0x7a8   : > { %v1295_v12 = vmul.f32 1.442695, %v1294_v11  ;;  %v1763_v11 = vld [vmem:[%s4798_s0 + $0x20] sm:$0xff] }
 0x7a9   : > { %v1468_v13 = vpop.xlane.xlu0 %1467  ;;  %v1303_v23 = vpop.permute.xlu1 %1302 }
 0x7aa   : > { %3670 = vpow2.f32 %v1295_v12  ;;  %v1469_v14 = vsub.f32 %v1462_v4, %v1468_v13  ;;  %v1764_v12 = vld [vmem:[%s4798_s0 + $0x28] sm:$0xff] }
 0x7ab   : > { %v3521_v13 = vpack.c.bf16 %v1764_v12, %v1763_v11 }
 0x7ac   : > { %v1470_v15 = vmul.f32 1.442695, %v1469_v14 }
 0x7ae   : > { %3672 = vpow2.f32 %v1470_v15 }
 0x7b0   : > { %v3669_v16 = vpop.eup %3668 }
 0x7b1   : > { %v1122_v17 = vsel %vm870_vm4, %v3669_v16, 0.0 }
 0x7b2   : > { %1123 = vadd.xlane.f32.xlu0 %v1122_v17 }
 0x7b4   : > { %v3671_v18 = vpop.eup %3670 }
 0x7b5   : > { %v1297_v19 = vsel %vm870_vm4, %v3671_v18, 0.0 }
 0x7b6   : > { %1298 = vadd.xlane.f32.xlu0 %v1297_v19 }
 0x7b8   : > { %v3673_v20 = vpop.eup %3672 }
 0x7b9   : > { %v1472_v21 = vsel %vm870_vm4, %v3673_v20, 0.0 }
 0x7ba   : > { %1473 = vadd.xlane.f32.xlu1 %v1472_v21 }
 0x7cb   : > { %1477 = vrot.lane.b32.xlu1 %v4316_v37, %s4746_s17  ;;  %s4752_s17 = smov 16  }
 0x7cc   : > { %1127 = vrot.lane.b32.xlu0 %v4316_v37, %s4745_s22  ;;  %v3503_v37 = vpack.c.bf16 %v1561_v36, %v1560_v35  ;;  %s4805_s22 = smov 88  }
 0x7ce   : > { %3504 = vmatpush3.bf16.msra.mxu1 %v3503_v37 }
 0x7cf   : > { %3505 = vmatprep.subr.bf16.mxu1 %v3929_v0 }
 0x7d2   : > { %3507 = vmatpush3.bf16.msra.mxu1 %v3506_v40 }
 0x7d3   : > { %3514 = vmatprep.subr.bf16.mxu1 %v3929_v0 }
 0x83f   : > { %v1124_v22 = vpop.xlane.xlu0 %1123 }
 0x840   : > { %3674 = vrcp.f32 %v1124_v22 }
 0x843   : > { %v1299_v24 = vpop.xlane.xlu0 %1298 }
 0x844   : > { %3676 = vrcp.f32 %v1299_v24  ;;  %v1766_v24 = vld [vmem:[%s4798_s0 + $0x38] sm:$0xff] }
 0x847   : > { %v1474_v25 = vpop.xlane.xlu1 %1473  ;;  %v1128_v26 = vpop.permute.xlu0 %1127 }
 0x848   : > { %3678 = vrcp.f32 %v1474_v25  ;;  %3336 = vmatpush3.msra.mxu0 %v1128_v26  ;;  %v3158_v26 = vld [vmem:[%s4801_s23] ss:$0 sm:$0xff] }
 0x849   : > { %3345 = vmatprep.subr.mxu0 %v3931_v1 }
 0x84a   : > { %v3675_v27 = vpop.eup %3674 }
 0x84b   : > { %v1126_v28 = vmul.f32 %v3675_v27, %v3669_v16  ;;  %v1478_v31 = vpop.permute.xlu1 %1477 }
 0x84d   : > { %3338 = vmatmul.mubr.msk.f32.vlgmr.msra.gmra.mrb[6].mxu0 %vm870_vm4, %v1126_v28 }
 0x84e   : > { %v3677_v29 = vpop.eup %3676  ;;  %3346 = vmatpush3.msra.mxu0 %v1303_v23  ;;  %3347 = vmatprep.mubr.msk.f32.mxu0 %vm3930_vm0, %v3931_v1  ;;  %v1765_v23 = vld [vmem:[%s4798_s0 + $0x30] sm:$0xff] }
 0x84f   : > { %v1301_v30 = vmul.f32 %v3677_v29, %v3671_v18  ;;  %3355 = vmatprep.subr.mxu0 %v3931_v1  ;;  %v3156_v18 = vld [vmem:[%s4799_s21] ss:$0 sm:$0xff]  ;;  %v3524_v25 = vpack.c.bf16 %v1766_v24, %v1765_v23 }
 0x851   : > { %3348 = vmatmul.mubr.msk.f32.vlgmr.msra.gmra.mrb[8].mxu0 %vm870_vm4, %v1301_v30 }
 0x852   : > { %v3679_v33 = vpop.eup %3678  ;;  %3356 = vmatpush3.msra.mxu0 %v1478_v31  ;;  %3357 = vmatprep.mubr.msk.f32.mxu0 %vm3930_vm0, %v3931_v1  ;;  %v3160_v31 = vld [vmem:[%s4802_s24] ss:$0 sm:$0xff] }
 0x853   : > { %v1476_v34 = vmul.f32 %v3679_v33, %v3673_v20  ;;  %3508 = vmatprep.subr.bf16.mxu0 %v3929_v0 }
 0x855   : > { %3358 = vmatmul.mubr.msk.f32.vlgmr.msra.gmra.mrb[10].mxu0 %vm870_vm4, %v1476_v34 }
 0x856   : > { %3379 = vmatprep.mubr.msk.f32.mxu0 %vm3930_vm0, %v3931_v1  ;;  %3510 = vmatpush3.bf16.msra.mxu0 %v3509_v2 }
 0x857   : > { %3511 = vmatprep.subr.bf16.mxu0 %v3929_v0 }
 0x920   : > { %v1199_v41 = vpop.f32.mrb[6].mxu0 }
 0x921   : > { %1204 = vrot.lane.b32.xlu1 %v1199_v41, %s4753_s20  ;;  %v3339_v42 = vpop.f32.mrb[7].mxu0  ;;  %s4810_s20 = smov 104  }
 0x924   : > { %v1374_v43 = vpop.f32.mrb[8].mxu0 }
 0x925   : > { %1379 = vrot.lane.b32.xlu0 %v1374_v43, %s4752_s17  ;;  %v3349_v44 = vpop.f32.mrb[9].mxu0  ;;  %s4800_s17 = sld [smem:[#allocation30_spill]]  ;;  %v3164_v43 = vld [vmem:[%s4795_s6 + $0x20] sm:$0xff] }
 0x926   : > { %v3165_v44 = vld [vmem:[%s4795_s6 + $0x28] sm:$0xff] }
 0x928   : > { %v1549_v45 = vpop.f32.mrb[10].mxu0 }
 0x929   : > { %1554 = vrot.lane.b32.xlu1 %v1549_v45, %s4751_s12  ;;  %v3359_v46 = vpop.f32.mrb[11].mxu0  ;;  %v3527_v45 = vpack.c.bf16 %v3165_v44, %v3164_v43  ;;  %s4807_s12 = smov 120  }
 0x92a   : > { %v3166_v46 = vld [vmem:[%s4795_s6 + $0x30] sm:$0xff] }
 0x92b   : > { %v3157_v20 = vld [vmem:[%s4800_s17] ss:$0 sm:$0xff] }
 0x993   : > { %v1205_v47 = vpop.permute.xlu1 %1204 }
 0x994   : > { %1208 = vst.msk [vmem:[#allocation3] sm:$0xff] %vm1207_vm5, %v1205_v47  ;;  %v3167_v47 = vld [vmem:[%s4795_s6 + $0x38] sm:$0xff] }
 0x997   : > { %v1380_v48 = vpop.permute.xlu0 %1379 }
 0x998   : > { %1383 = vst.msk [vmem:[#allocation3] sm:$0xff] %vm1382_vm6, %v1380_v48  ;;  %v3530_v48 = vpack.c.bf16 %v3167_v47, %v3166_v46 }
 0x99b   : > { %v1555_v49 = vpop.permute.xlu1 %1554 }
 0x99c   : > { %1558 = vst.msk [vmem:[#allocation3] sm:$0xff] %vm1557_vm7, %v1555_v49 }
 0x9a3   : > { %v1559_v50 = vld [vmem:[#allocation3] sm:$0xff] }
 0x9a4   : > { %3369 = vmatmul.mubr.msk.f32.vlgmr.msra.gmra.mrb[8].mxu1 %vm742_vm2, %v1559_v50 }
 0x9a5   : > { %3398 = vmatprep.mubr.msk.f32.mxu1 %vm3930_vm0, %v3931_v1  ;;  %3516 = vmatpush3.bf16.msra.mxu1 %v3515_v8 }
 0x9a6   : > { %3517 = vmatprep.subr.bf16.mxu1 %v3929_v0 }
 0x9a9   : > { %3519 = vmatpush3.bf16.msra.mxu1 %v3518_v10 }
 0x9aa   : > { %3520 = vmatprep.subr.bf16.mxu1 %v3929_v0 }
 0x9ad   : > { %3522 = vmatpush3.bf16.msra.mxu1 %v3521_v13 }
 0x9ae   : > { %3523 = vmatprep.subr.bf16.mxu1 %v3929_v0 }
 0x9b1   : > { %3525 = vmatpush3.bf16.msra.mxu1 %v3524_v25 }
 0x9b2   : > { %3422 = vmatprep.subr.mxu1 %v3931_v1 }
 0xa77   : > { %v1640_v52 = vpop.f32.mrb[8].mxu1 }
 0xa78   : > { %v1641_v53 = vadd.f32 %v3154_v51, %v1640_v52  ;;  %v3370_v54 = vpop.f32.mrb[9].mxu1 }
 0xa7a   : > { %v1644_v55 = vadd.f32 %v1641_v53, %v4306_v32  ;;  %v1676_v32 = vld [vmem:[%s4722_s10 + $0x10] sm:$0xff]  ;;  %v3162_v53 = vld [vmem:[%s4803_s26] ss:$0 sm:$0xff] }
 0xa7b   : > { %v3512_v4 = vpack.c.bf16 %v1677_v3, %v1676_v32 }
 0xa7c   : > { %v1647_v56 = vsel %vm742_vm2, %v1644_v55, 0.0 }
 0xa7d   : > { %1648 = vadd.xlane.f32.xlu0 %v1647_v56  ;;  %3513 = vmatpush3.bf16.msra.mxu0 %v3512_v4 }
 0xa7e   : > { %3526 = vmatprep.subr.bf16.mxu0 %v3929_v0 }
 0xb0a   : > { %v1649_v57 = vpop.xlane.xlu0 %1648 }
 0xb0b   : > { %v1650_v58 = vmul.f32 0.03125, %v1649_v57 }
 0xb0d   : > { %v1651_v59 = vsub.f32 %v1644_v55, %v1650_v58  ;;  %v3163_v55 = vld [vmem:[%s4804_s19] ss:$0 sm:$0xff]  ;;  %v3169_v58 = vld [vmem:[%s4797_s7 + $0x1] ss:$0 sm:$0xff]  ;;  %s4819_s7 = sld [smem:[#allocation33_spill]] }
 0xb0f   : > { %v1652_v60 = vmul.f32 %v1651_v59, %v1651_v59 }
 0xb11   : > { %v1653_v61 = vsel %vm742_vm2, %v1652_v60, 0.0 }
 0xb12   : > { %1654 = vadd.xlane.f32.xlu1 %v1653_v61 }
 0xb9f   : > { %v1655_v14 = vpop.xlane.xlu1 %1654 }
 0xba0   : > { %v1656_v15 = vmul.f32 0.03125, %v1655_v14 }
 0xba2   : > { %v1657_v16 = vadd.f32 1e-05, %v1656_v15 }
 0xba4   : > { %3680 = vrsqrt.f32 %v1657_v16 }
 0xbae   : > { %v3681_v17 = vpop.eup %3680 }
 0xbaf   : > { %v1659_v19 = vmul.f32 %v3681_v17, %v1651_v59 }
 0xbb1   : > { %v1666_v21 = vmul.f32 %v3156_v18, %v1659_v19 }
 0xbb3   : > { %v1673_v22 = vadd.f32 %v3157_v20, %v1666_v21 }
 0xbb5   : > { %3380 = vmatmul.mubr.msk.f32.vlgmr.msra.gmra.mrb[12].mxu0 %vm742_vm2, %v1673_v22 }
 0xbb6   : > { %3409 = vmatprep.mubr.msk.f32.mxu0 %vm3930_vm0, %v3931_v1  ;;  %3528 = vmatpush3.bf16.msra.mxu0 %v3527_v45 }
 0xbb7   : > { %3529 = vmatprep.subr.bf16.mxu0 %v3929_v0 }
 0xbba   : > { %3531 = vmatpush3.bf16.msra.mxu0 %v3530_v48 }
 0xbbb   : > { %3412 = vmatprep.subr.mxu0 %v3931_v1 }
 0xc88   : > { %v1754_v27 = vpop.f32.mrb[12].mxu0 }
 0xc89   : > { %v1755_v28 = vadd.f32 %v3158_v26, %v1754_v27  ;;  %v3381_v29 = vpop.f32.mrb[13].mxu0 }
 0xc8b   : > { %v1758_v30 = vmax.f32 %v1755_v28, 0.0 }
 0xc8d   : > { %3399 = vmatmul.mubr.msk.f32.vlgmr.msra.gmra.mrb[10].mxu1 %vm1774_vm8, %v1758_v30 }
 0xc8e   : > { %3424 = vmatprep.mubr.msk.f32.mxu1 %vm3930_vm0, %v3931_v1 }
 0xd60   : > { %v1844_v33 = vpop.f32.mrb[10].mxu1 }
 0xd61   : > { %v1845_v34 = vadd.f32 %v3160_v31, %v1844_v33  ;;  %v3400_v35 = vpop.f32.mrb[11].mxu1 }
 0xd63   : > { %v1848_v36 = vadd.f32 %v1845_v34, %v1673_v22 }
 0xd65   : > { %v1851_v37 = vsel %vm742_vm2, %v1848_v36, 0.0 }
 0xd66   : > { %1852 = vadd.xlane.f32.xlu0 %v1851_v37 }
 0xdf3   : > { %v1853_v38 = vpop.xlane.xlu0 %1852 }
 0xdf4   : > { %v1854_v39 = vmul.f32 0.03125, %v1853_v38 }
 0xdf6   : > { %v1855_v40 = vsub.f32 %v1848_v36, %v1854_v39 }
 0xdf8   : > { %v1856_v41 = vmul.f32 %v1855_v40, %v1855_v40 }
 0xdfa   : > { %v1857_v42 = vsel %vm742_vm2, %v1856_v41, 0.0 }
 0xdfb   : > { %1858 = vadd.xlane.f32.xlu0 %v1857_v42 }
 0xe88   : > { %v1859_v49 = vpop.xlane.xlu0 %1858 }
 0xe89   : > { %v1860_v50 = vmul.f32 0.03125, %v1859_v49 }
 0xe8b   : > { %v1861_v51 = vadd.f32 1e-05, %v1860_v50 }
 0xe8d   : > { %3682 = vrsqrt.f32 %v1861_v51 }
 0xe97   : > { %v3683_v52 = vpop.eup %3682 }
 0xe98   : > { %v1863_v54 = vmul.f32 %v3683_v52, %v1855_v40 }
 0xe9a   : > { %v1870_v56 = vmul.f32 %v3162_v53, %v1863_v54 }
 0xe9c   : > { %v4494_v57 = vadd.f32 %v3163_v55, %v1870_v56 }
 0xe9e   : > { %3410 = vmatmul.mubr.msk.f32.vlgmr.msra.gmra.mrb[14].mxu0 %vm742_vm2, %v4494_v57 }
 0xe9f   : > { %3414 = vmatprep.mubr.msk.f32.mxu0 %vm3930_vm0, %v3931_v1 }
 0xf71   : > { %v1960_v59 = vpop.f32.mrb[14].mxu0 }
 0xf72   : > { %v1961_v60 = vadd.f32 %v3169_v58, %v1960_v59  ;;  %v3411_v61 = vpop.f32.mrb[15].mxu0  ;;  %v3183_v58 = vld [vmem:[%s4720_s8 + $0x20] sm:$0xff]  ;;  %v3184_v59 = vld [vmem:[%s4720_s8 + $0x28] sm:$0xff] }
 0xf73   : > { %v3533_v61 = vpack.c.bf16 %v3184_v59, %v3183_v58 }
 0xf74   : > { %1964 = vst.msk [vmem:[#allocation2] sm:$0xff] %vm863_vm3, %v1961_v60 }
 0xf7b   : > { %v4504_v62 = vld [vmem:[#allocation2] sm:$0xff] }
 0xf7c   : > { %2139 = vrot.lane.b32.xlu1 %v4504_v62, %s4805_s22  ;;  %1968 = vrot.lane.b32.xlu0 %v4504_v62, %s4806_s13  ;;  %v1966_v63 = vmul.f32 0.35355338, %v4504_v62  ;;  %s4813_s22 = smov 48   ;;  %s4814_s13 = smov 40  }
 0xf80   : > { %2136 = vrot.lane.b32.xlu1 %v1966_v63, %s4807_s12  ;;  %2310 = vrot.lane.b32.xlu0 %v1966_v63, %s4808_s11  ;;  %s4815_s12 = smov 56   ;;  %s4816_s11 = smov 8  }
 0xf84   : > { %2313 = vrot.lane.b32.xlu1 %v4504_v62, %s4809_s14  ;;  %2484 = vrot.lane.b32.xlu0 %v1966_v63, %s4810_s20  ;;  %s4817_s14 = smov 16   ;;  %s3216_s20 = sshll.u32 %s4063_s1, 4 }
 0xf85   : > { %s3946_s1 = smov [#allocation13]  }
 0xf88   : > { %2487 = vrot.lane.b32.xlu1 %v4504_v62, %s4811_s4  ;;  %s4812_s4 = smov 64  }
 0xfee   : > { %v2140_v2 = vpop.permute.xlu1 %2139  ;;  %v1969_v32 = vpop.permute.xlu0 %1968 }
 0xfef   : > { %3413 = vmatpush3.xpose.msk.msra.mxu0 %vm870_vm4, %v1969_v32  ;;  %3423 = vmatpush3.xpose.msk.msra.mxu1 %vm870_vm4, %v2140_v2 }
 0xff0   : > { %3432 = vmatprep.subr.mxu1 %v3931_v1  ;;  %3417 = vmatprep.subr.mxu0 %v3931_v1 }
 0xff2   : > { %v2137_v3 = vpop.permute.xlu1 %2136  ;;  %3415 = vmatmul.mubr.msk.f32.vlgmr.msra.gmra.mrb[16].mxu0 %vm870_vm4, %v1966_v63  ;;  %v2311_v5 = vpop.permute.xlu0 %2310  ;;  %v3186_v63 = vld [vmem:[%s4720_s8 + $0x38] sm:$0xff] }
 0xff3   : > { %3425 = vmatmul.mubr.msk.f32.vlgmr.msra.gmra.mrb[12].mxu1 %vm870_vm4, %v2137_v3  ;;  %3419 = vmatprep.mubr.msk.f32.mxu0 %vm3930_vm0, %v3931_v1 }
 0xff4   : > { %3434 = vmatprep.mubr.msk.f32.mxu1 %vm3930_vm0, %v3931_v1 }
 0xff6   : > { %v2314_v4 = vpop.permute.xlu1 %2313  ;;  %v2485_v7 = vpop.permute.xlu0 %2484 }
 0xff7   : > { %3433 = vmatpush3.xpose.msk.msra.mxu1 %vm870_vm4, %v2314_v4 }
 0xff8   : > { %3442 = vmatprep.subr.mxu1 %v3931_v1 }
 0xffa   : > { %v2488_v6 = vpop.permute.xlu1 %2487  ;;  %3435 = vmatmul.mubr.msk.f32.vlgmr.msra.gmra.mrb[14].mxu1 %vm870_vm4, %v2311_v5 }
 0xffb   : > { %3443 = vmatpush3.xpose.msk.msra.mxu1 %vm870_vm4, %v2488_v6  ;;  %3444 = vmatprep.mubr.msk.f32.mxu1 %vm3930_vm0, %v3931_v1 }
 0xffc   : > { %3532 = vmatprep.subr.bf16.mxu1 %v3929_v0 }
 0xffe   : > { %3445 = vmatmul.mubr.msk.f32.vlgmr.msra.gmra.mrb[16].mxu1 %vm870_vm4, %v2485_v7 }
 0xfff   : > { %3460 = vmatprep.mubr.msk.f32.mxu1 %vm3930_vm0, %v3931_v1  ;;  %3534 = vmatpush3.bf16.msra.mxu1 %v3533_v61 }
0x1000   : > { %3535 = vmatprep.subr.bf16.mxu1 %v3929_v0 }
0x10c5   : > { %v2041_v8 = vpop.f32.mrb[16].mxu0 }
0x10c6   : > { %v3416_v9 = vpop.f32.mrb[17].mxu0  ;;  %v2211_v10 = vpop.f32.mrb[12].mxu1  ;;  %v2045_v11 = vsel %vm870_vm4, %v2041_v8, -inf }
0x10c7   : > { %v3426_v12 = vpop.f32.mrb[13].mxu1  ;;  %2046 = vmax.xlane.f32.xlu1 %v2045_v11  ;;  %v2215_v13 = vsel %vm870_vm4, %v2211_v10, -inf }
0x10c8   : > { %2216 = vmax.xlane.f32.xlu0 %v2215_v13  ;;  %v3188_v13 = vld [vmem:[%s4721_s9 + $0x1] ss:$0 sm:$0xff] }
0x10cd   : > { %v2385_v14 = vpop.f32.mrb[14].mxu1 }
0x10ce   : > { %v3436_v15 = vpop.f32.mrb[15].mxu1  ;;  %v2389_v16 = vsel %vm870_vm4, %v2385_v14, -inf }
0x10cf   : > { %2390 = vmax.xlane.f32.xlu0 %v2389_v16 }
0x10d1   : > { %v2559_v17 = vpop.f32.mrb[16].mxu1 }
0x10d2   : > { %v3446_v18 = vpop.f32.mrb[17].mxu1  ;;  %v2563_v19 = vsel %vm870_vm4, %v2559_v17, -inf }
0x10d3   : > { %2564 = vmax.xlane.f32.xlu0 %v2563_v19 }
0x10d8   : > { %2056 = vrot.lane.b32.xlu1 %v4504_v62, %s4812_s4  ;;  %s652_s4 = scalar_lea.vmem [#allocation13], %s4260_s3 }
0x1154   : > { %v2047_v20 = vpop.xlane.xlu1 %2046 }
0x1155   : > { %v2048_v21 = vsub.f32 %v2041_v8, %v2047_v20  ;;  %v2217_v22 = vpop.xlane.xlu0 %2216 }
0x1156   : > { %v2218_v23 = vsub.f32 %v2211_v10, %v2217_v22 }
0x1157   : > { %v2049_v24 = vmul.f32 1.442695, %v2048_v21 }
0x1158   : > { %v2219_v25 = vmul.f32 1.442695, %v2218_v23  ;;  %v2057_v26 = vpop.permute.xlu1 %2056 }
0x1159   : > { %3684 = vpow2.f32 %v2049_v24  ;;  %3418 = vmatpush3.msra.mxu0 %v2057_v26  ;;  %v3195_v24 = vld [vmem:[%s4722_s10 + $0x28] sm:$0xff]  ;;  %v3197_v26 = vld [vmem:[%s4722_s10 + $0x38] sm:$0xff] }
0x115a   : > { %3686 = vpow2.f32 %v2219_v25  ;;  %3427 = vmatprep.subr.mxu0 %v3931_v1 }
0x115c   : > { %v2391_v27 = vpop.xlane.xlu0 %2390 }
0x115d   : > { %v2392_v28 = vsub.f32 %v2385_v14, %v2391_v27 }
0x115f   : > { %v2393_v29 = vmul.f32 1.442695, %v2392_v28  ;;  %v3201_v28 = vld [vmem:[%s4798_s0 + $0x40] sm:$0xff] }
0x1160   : > { %v2565_v30 = vpop.xlane.xlu0 %2564 }
0x1161   : > { %3688 = vpow2.f32 %v2393_v29  ;;  %v2566_v31 = vsub.f32 %v2559_v17, %v2565_v30  ;;  %v3202_v29 = vld [vmem:[%s4798_s0 + $0x48] sm:$0xff]  ;;  %v3203_v30 = vld [vmem:[%s4798_s0 + $0x50] sm:$0xff] }
0x1163   : > { %v3685_v33 = vpop.eup %3684  ;;  %v2567_v34 = vmul.f32 1.442695, %v2566_v31  ;;  %v3545_v31 = vpack.c.bf16 %v3202_v29, %v3201_v28 }
0x1164   : > { %v3687_v35 = vpop.eup %3686  ;;  %v2051_v36 = vsel %vm870_vm4, %v3685_v33, 0.0 }
0x1165   : > { %3690 = vpow2.f32 %v2567_v34  ;;  %2052 = vadd.xlane.f32.xlu1 %v2051_v36  ;;  %v2221_v37 = vsel %vm870_vm4, %v3687_v35, 0.0  ;;  %v3206_v36 = vld [vmem:[%s4798_s0 + $0x68] sm:$0xff] }
0x1166   : > { %2222 = vadd.xlane.f32.xlu0 %v2221_v37 }
0x116b   : > { %v3689_v38 = vpop.eup %3688 }
0x116c   : > { %v2395_v39 = vsel %vm870_vm4, %v3689_v38, 0.0 }
0x116d   : > { %2396 = vadd.xlane.f32.xlu1 %v2395_v39 }
0x116f   : > { %v3691_v40 = vpop.eup %3690 }
0x1170   : > { %v2569_v41 = vsel %vm870_vm4, %v3691_v40, 0.0 }
0x1171   : > { %2570 = vadd.xlane.f32.xlu0 %v2569_v41 }
0x117e   : > { %2400 = vrot.lane.b32.xlu1 %v4504_v62, %s4813_s22  ;;  %s3007_s22 = sshll.u32 %s652_s4, 4  ;;  %s4670_s22 = int_to_ptr.vmem [resolvable:$true] %s3007_s22 }
0x1182   : > { %2574 = vrot.lane.b32.xlu1 %v4504_v62, %s4814_s13 }
0x1187   : > { %2226 = vrot.lane.b32.xlu0 %v4504_v62, %s4815_s12  ;;  %v3185_v62 = vld [vmem:[%s4720_s8 + $0x30] sm:$0xff]  ;;  %s4668_s12 = scalar_lea.hbm %s4819_s7, %s3216_s20 }
0x1188   : > { %v3536_v32 = vpack.c.bf16 %v3186_v63, %v3185_v62 }
0x118a   : > { %3537 = vmatpush3.bf16.msra.mxu1 %v3536_v32 }
0x118b   : > { %3544 = vmatprep.subr.bf16.mxu1 %v3929_v0 }
0x11f2   : > { %v2053_v42 = vpop.xlane.xlu1 %2052 }
0x11f3   : > { %3692 = vrcp.f32 %v2053_v42  ;;  %v2223_v43 = vpop.xlane.xlu0 %2222  ;;  %v3192_v42 = vld [vmem:[%s4799_s21 + $0x1] ss:$0 sm:$0xff] }
0x11f4   : > { %3694 = vrcp.f32 %v2223_v43 }
0x11fa   : > { %v2397_v44 = vpop.xlane.xlu1 %2396 }
0x11fb   : > { %3696 = vrcp.f32 %v2397_v44  ;;  %v3193_v44 = vld [vmem:[%s4800_s17 + $0x1] ss:$0 sm:$0xff] }
0x11fd   : > { %v3693_v45 = vpop.eup %3692 }
0x11fe   : > { %v2055_v46 = vmul.f32 %v3693_v45, %v3685_v33  ;;  %v2571_v47 = vpop.xlane.xlu0 %2570  ;;  %v3695_v48 = vpop.eup %3694  ;;  %v3204_v33 = vld [vmem:[%s4798_s0 + $0x58] sm:$0xff] }
0x11ff   : > { %3698 = vrcp.f32 %v2571_v47  ;;  %v2225_v49 = vmul.f32 %v3695_v48, %v3687_v35  ;;  %v2401_v50 = vpop.permute.xlu1 %2400  ;;  %v3548_v34 = vpack.c.bf16 %v3204_v33, %v3203_v30  ;;  %v3205_v35 = vld [vmem:[%s4798_s0 + $0x60] sm:$0xff]  ;;  %v3208_v47 = vld [vmem:[%s4798_s0 + $0x78] sm:$0xff] }
0x1200   : > { %3420 = vmatmul.mubr.msk.f32.vlgmr.msra.gmra.mrb[18].mxu0 %vm870_vm4, %v2055_v46  ;;  %v3551_v37 = vpack.c.bf16 %v3206_v36, %v3205_v35 }
0x1201   : > { %3429 = vmatprep.mubr.msk.f32.mxu0 %vm3930_vm0, %v3931_v1 }
0x1202   : > { %v2227_v51 = vpop.permute.xlu0 %2226 }
0x1203   : > { %3428 = vmatpush3.msra.mxu0 %v2227_v51  ;;  %v2575_v54 = vpop.permute.xlu1 %2574 }
0x1204   : > { %3430 = vmatmul.mubr.msk.f32.vlgmr.msra.gmra.mrb[20].mxu0 %vm870_vm4, %v2225_v49  ;;  %3437 = vmatprep.subr.mxu0 %v3931_v1  ;;  %v3199_v49 = vld [vmem:[%s4801_s23 + $0x1] ss:$0 sm:$0xff] }
0x1205   : > { %v3697_v52 = vpop.eup %3696  ;;  %3438 = vmatpush3.msra.mxu0 %v2401_v50  ;;  %3439 = vmatprep.mubr.msk.f32.mxu0 %vm3930_vm0, %v3931_v1 }
0x1206   : > { %v2399_v53 = vmul.f32 %v3697_v52, %v3689_v38  ;;  %3447 = vmatprep.subr.mxu0 %v3931_v1 }
0x1208   : > { %3440 = vmatmul.mubr.msk.f32.vlgmr.msra.gmra.mrb[22].mxu0 %vm870_vm4, %v2399_v53 }
0x1209   : > { %v3699_v55 = vpop.eup %3698  ;;  %3448 = vmatpush3.msra.mxu0 %v2575_v54  ;;  %3449 = vmatprep.mubr.msk.f32.mxu0 %vm3930_vm0, %v3931_v1  ;;  %v3210_v54 = vld [vmem:[%s4802_s24 + $0x1] ss:$0 sm:$0xff] }
0x120a   : > { %v2573_v56 = vmul.f32 %v3699_v55, %v3691_v40  ;;  %3538 = vmatprep.subr.bf16.mxu0 %v3929_v0 }
0x120c   : > { %3450 = vmatmul.mubr.msk.f32.vlgmr.msra.gmra.mrb[24].mxu0 %vm870_vm4, %v2573_v56 }
0x120d   : > { %3471 = vmatprep.mubr.msk.f32.mxu0 %vm3930_vm0, %v3931_v1 }
0x12d3   : > { %v2128_v60 = vpop.f32.mrb[18].mxu0 }
0x12d4   : > { %2132 = vst.msk [vmem:[#allocation3] sm:$0xff] %vm870_vm4, %v2128_v60  ;;  %v3421_v2 = vpop.f32.mrb[19].mxu0 }
0x12d7   : > { %v2298_v3 = vpop.f32.mrb[20].mxu0 }
0x12d8   : > { %2303 = vrot.lane.b32.xlu1 %v2298_v3, %s4816_s11  ;;  %v3431_v4 = vpop.f32.mrb[21].mxu0  ;;  %s2995_s11 = scalar_lea.sflag [#allocation6], %s4260_s3 }
0x12db   : > { %v2472_v5 = vpop.f32.mrb[22].mxu0 }
0x12dc   : > { %2477 = vrot.lane.b32.xlu0 %v2472_v5, %s4817_s14  ;;  %v3441_v6 = vpop.f32.mrb[23].mxu0  ;;  %s3846_s14 = scalar_lea.vmem %s4670_s22, 16 }
0x12dd   : > { %p3847_p5 = scmp.ne.s32.totalorder %s4670_s22, %s3846_s14 }
0x12df   : > { %v2646_v7 = vpop.f32.mrb[24].mxu0  ;;  %p3848_p9 = pnand %p3847_p5, %p4820_p7 }
0x12e0   : > { %2651 = vrot.lane.b32.xlu1 %v2646_v7, %s4818_s5  ;;  %v3451_v8 = vpop.f32.mrb[25].mxu0  ;;  %v3214_v7 = vld [vmem:[%s4803_s26 + $0x1] ss:$0 sm:$0xff]  ;;  %s3850_s5 = sshll.u32 %s3946_s1, 4  ;;  %s3851_s5 = int_to_ptr.vmem [resolvable:$false] %s3850_s5 }
0x12e1   : > { %p3849_p12 = pneg %p3848_p9  ;;  %p3853_p3 = scmp.lt.s32.totalorder %s4670_s22, %s3851_s5 }
0x134a   : > { %v2304_v9 = vpop.permute.xlu1 %2303 }
0x134b   : > { %2306 = vst.msk [vmem:[#allocation3] sm:$0xff] %vm1207_vm5, %v2304_v9  ;;  %v3215_v9 = vld [vmem:[%s4804_s19 + $0x1] ss:$0 sm:$0xff] }
0x134e   : > { %v2478_v10 = vpop.permute.xlu0 %2477 }
0x134f   : > { %2480 = vst.msk [vmem:[#allocation3] sm:$0xff] %vm1382_vm6, %v2478_v10 }
0x1352   : > { %v2652_v11 = vpop.permute.xlu1 %2651 }
0x1353   : > { %2654 = vst.msk [vmem:[#allocation3] sm:$0xff] %vm1557_vm7, %v2652_v11 }
0x135a   : > { %v2655_v12 = vld [vmem:[#allocation3] sm:$0xff] }
0x135b   : > { %3461 = vmatmul.mubr.msk.f32.vlgmr.msra.gmra.mrb[18].mxu1 %vm742_vm2, %v2655_v12 }
0x135c   : > { %3490 = vmatprep.mubr.msk.f32.mxu1 %vm3930_vm0, %v3931_v1  ;;  %v3194_v1 = vld [vmem:[%s4722_s10 + $0x20] sm:$0xff]  ;;  %3546 = vmatpush3.bf16.msra.mxu1 %v3545_v31 }
0x135d   : > { %v3539_v25 = vpack.c.bf16 %v3195_v24, %v3194_v1  ;;  %3547 = vmatprep.subr.bf16.mxu1 %v3929_v0 }
0x135f   : > { %3540 = vmatpush3.bf16.msra.mxu0 %v3539_v25 }
0x1360   : > { %3541 = vmatprep.subr.bf16.mxu0 %v3929_v0  ;;  %3549 = vmatpush3.bf16.msra.mxu1 %v3548_v34 }
0x1361   : > { %3550 = vmatprep.subr.bf16.mxu1 %v3929_v0 }
0x1364   : > { %3552 = vmatpush3.bf16.msra.mxu1 %v3551_v37 }
0x1365   : > { %3553 = vmatprep.subr.bf16.mxu1 %v3929_v0  ;;  %v3207_v0 = vld [vmem:[%s4798_s0 + $0x70] sm:$0xff]  ;;  %s3852_s0 = scalar_lea.vmem %s3851_s5, 32 }
0x1366   : > { %v3554_v48 = vpack.c.bf16 %v3208_v47, %v3207_v0  ;;  %p3854_p13 = scmp.lt.s32.totalorder %s3852_s0, %s3846_s14 }
0x1368   : > { %3555 = vmatpush3.bf16.msra.mxu1 %v3554_v48  ;;  %p3855_p0 = por %p3854_p13, %p3853_p3 }
0x136a   : > { %p3856_p2 = pnand %p3855_p0, %p3849_p12 }
0x142e   : > { %v2738_v14 = vpop.f32.mrb[18].mxu1 }
0x142f   : > { %v2739_v15 = vadd.f32 %v3188_v13, %v2738_v14  ;;  %v3462_v16 = vpop.f32.mrb[19].mxu1 }
0x1431   : > { %v2742_v17 = vadd.f32 %v2739_v15, %v4494_v57  ;;  %v3196_v57 = vld [vmem:[%s4722_s10 + $0x30] sm:$0xff] }
0x1432   : > { %v3542_v27 = vpack.c.bf16 %v3197_v26, %v3196_v57 }
0x1433   : > { %v2747_v18 = vsel %vm742_vm2, %v2742_v17, 0.0 }
0x1434   : > { %2748 = vadd.xlane.f32.xlu0 %v2747_v18  ;;  %3543 = vmatpush3.bf16.msra.mxu0 %v3542_v27 }
0x14c1   : > { %v2749_v19 = vpop.xlane.xlu0 %2748 }
0x14c2   : > { %v2750_v20 = vmul.f32 0.03125, %v2749_v19 }
0x14c4   : > { %v2751_v21 = vsub.f32 %v2742_v17, %v2750_v20 }
0x14c6   : > { %v2752_v22 = vmul.f32 %v2751_v21, %v2751_v21 }
0x14c8   : > { %v2753_v23 = vsel %vm742_vm2, %v2752_v22, 0.0 }
0x14c9   : > { %2754 = vadd.xlane.f32.xlu1 %v2753_v23 }
0x1556   : > { %v2755_v38 = vpop.xlane.xlu1 %2754 }
0x1557   : > { %v2756_v39 = vmul.f32 0.03125, %v2755_v38 }
0x1559   : > { %v2757_v40 = vadd.f32 1e-05, %v2756_v39 }
0x155b   : > { %3700 = vrsqrt.f32 %v2757_v40 }
0x1565   : > { %v3701_v41 = vpop.eup %3700 }
0x1566   : > { %v2759_v43 = vmul.f32 %v3701_v41, %v2751_v21 }
0x1568   : > { %v2766_v45 = vmul.f32 %v3192_v42, %v2759_v43 }
0x156a   : > { %v2773_v46 = vadd.f32 %v3193_v44, %v2766_v45 }
0x156c   : > { %3472 = vmatmul.mubr.msk.f32.vlgmr.msra.gmra.mrb[26].mxu0 %vm742_vm2, %v2773_v46 }
0x163f   : > { %v2856_v50 = vpop.f32.mrb[26].mxu0 }
0x1640   : > { %v2857_v51 = vadd.f32 %v3199_v49, %v2856_v50  ;;  %v3473_v52 = vpop.f32.mrb[27].mxu0 }
0x1642   : > { %v2860_v53 = vmax.f32 %v2857_v51, 0.0 }
0x1644   : > { %3491 = vmatmul.mubr.msk.f32.vlgmr.msra.gmra.mrb[20].mxu1 %vm1774_vm8, %v2860_v53 }
0x1717   : > { %v2947_v55 = vpop.f32.mrb[20].mxu1 }
0x1718   : > { %v2948_v56 = vadd.f32 %v3210_v54, %v2947_v55  ;;  %v3492_v58 = vpop.f32.mrb[21].mxu1 }
0x171a   : > { %v2951_v59 = vadd.f32 %v2948_v56, %v2773_v46 }
0x171c   : > { %v2956_v60 = vsel %vm742_vm2, %v2951_v59, 0.0 }
0x171d   : > { %2957 = vadd.xlane.f32.xlu0 %v2956_v60 }
0x17aa   : > { %v2958_v61 = vpop.xlane.xlu0 %2957 }
0x17ab   : > { %v2959_v62 = vmul.f32 0.03125, %v2958_v61 }
0x17ad   : > { %v2960_v63 = vsub.f32 %v2951_v59, %v2959_v62 }
0x17af   : > { %v2961_v2 = vmul.f32 %v2960_v63, %v2960_v63 }
0x17b1   : > { %v2962_v32 = vsel %vm742_vm2, %v2961_v2, 0.0 }
0x17b2   : > { %2963 = vadd.xlane.f32.xlu0 %v2962_v32 }
0x183f   : > { %v2964_v3 = vpop.xlane.xlu0 %2963 }
0x1840   : > { %v2965_v4 = vmul.f32 0.03125, %v2964_v3 }
0x1842   : > { %v2966_v5 = vadd.f32 1e-05, %v2965_v4 }
0x1844   : > { %3702 = vrsqrt.f32 %v2966_v5 }
0x184e   : > { %v3703_v6 = vpop.eup %3702 }
0x184f   : > { %v2968_v8 = vmul.f32 %v3703_v6, %v2960_v63 }
0x1851   : > { %v2975_v10 = vmul.f32 %v3214_v7, %v2968_v8 }
0x1853   : > { %v2982_v11 = vadd.f32 %v3215_v9, %v2975_v10 }
0x1855   : > { %v2983_v12 = vsel %vm742_vm2, %v2982_v11, 0.0 }
0x1856   : > { %v2984_v13 = vrot.slane %v2983_v12, 4 }
0x1858   : > { %v2985_v14 = vadd.f32 %v2984_v13, %v2983_v12 }
0x185a   : > { %v2986_v15 = vrot.slane %v2985_v14, 2 }
0x185c   : > { %v2987_v16 = vadd.f32 %v2986_v15, %v2985_v14 }
0x185e   : > { %v2988_v17 = vrot.slane %v2987_v16, 1 }
0x1860   : > { %v2989_v18 = vadd.f32 %v2988_v17, %v2987_v16 }
0x1862   : > { %v2991_v19 = vmul.f32 0.125, %v2989_v18 }
0x1864   : > { %2993 = vst.msk [vmem:[%s652_s4] sm:$0x1] %vm2992_vm9, %v2991_v19 }
0x1865   : > { %3859 = shalt.err (!%p3856_p2)
}
0x1866   : > { %s3860_s3 = scalar_lea.hbm %s4668_s12, 16  ;;  %s3864_s13 = scalar_lea.hbm %s4819_s7, 32 }
0x1867   : > { %p3861_p8 = scmp.ne.s32.totalorder %s4668_s12, %s3860_s3  ;;  %p3865_p11 = scmp.lt.u32.totalorder %s4668_s12, %s4819_s7 }
0x1868   : > { %p3866_p1 = scmp.lt.u32.totalorder %s3864_s13, %s3860_s3  ;;  %p3868_p5 = scmp.lt.u32.totalorder %s3860_s3, %s4668_s12 }
0x1869   : > { %p3862_p4 = pnand %p3861_p8, %p4820_p7 }
0x186a   : > { %p3867_p6 = por %p3866_p1, %p3865_p11 }
0x186b   : > { %p3863_p10 = pneg %p3862_p4 }
0x186c   : > { %p3869_p9 = por %p3868_p5, %p3867_p6 }
0x186e   : > { %p3870_p12 = pnand %p3869_p9, %p3863_p10 }
0x1870   : > { %3873 = shalt.err (!%p3870_p12)
}
0x1871   : > { %3574 = dma.vmem_to_hbm [thread:$0]  (%p4820_p7), %s4670_s22, 16, %s4668_s12, %s2995_s11  }
0x1872 PF: > { %s3019_s0 = sand.u32 1, %s3908_s27   ;;  %p4821_p3 = scmp.ne.s32.totalorder %s4787_s25, 0 }
0x1873   : > { %p4822_p13 = scmp.ge.s32.totalorder %s3920_s30, 2  ;;  %s3020_s14 = scalar_lea.sflag [#allocation6], %s3019_s0 }
0x1875   : > { %p3594_p0 = pnand %p4822_p13, %p4821_p3 }
0x1877   : > { %3903 = dma.done.wait (!%p3594_p0), %s3020_s14, 16  }
0x1878   : > { %3905 = vsyncadd (!%p3594_p0), %s3020_s14, 4294967280  ;;  %p33_p2 = scmp.ge.s32.totalorder %s4184_s2, 4   ;;  %s4823_s27 = smov %s3912_s28 }
0x1879   : > { %s4824_s28 = smov %s3916_s29  ;;  %s4825_s29 = smov %s4195_s15 }
0x187a   : > { %s4826_s30 = smov %s4184_s2  ;;  %35 = sbr.rel (!%p33_p2) target bundleno = 24 (0x18), region = 168 }
0x1881   :  { %3024 = vsyncpa [#allocation5], 1 }
0x1882   :  { %3026 = vsyncpa [#allocation5 + $0x1], 1 }
0x1883   :  { %3027 = vsyncpa [#allocation8], 1 }
0x1884   :  { %3028 = vsyncpa [#allocation11], 1 }
0x1885   :  { %3029 = vsyncpa [#allocation6], 1 }
0x1886   :  { %3031 = vsyncpa [#allocation6 + $0x1], 1 }

</bundles_post_ra>
